<compile_context>
chip_gen: v5e
topology: v5e:2x2
jax: 0.10.0
libtpu: 0.0.40
codegen_flags: <defaults>
</compile_context>

<pallas_src>
from functools import partial

import jax
import jax.numpy as jnp
from jax.experimental import pallas as pl
from jax.experimental.pallas import tpu as pltpu


def _round_up(x, m):
    return ((x + m - 1) // m) * m


def _cdiv(a, b):
    return -(-a // b)


def _block_diag(w, p):
    """Block-diagonal stack of p copies of w: (in, out) -> (p*in, p*out)."""
    d_in, d_out = w.shape
    out = jnp.zeros((p * d_in, p * d_out), dtype=w.dtype)
    for i in range(p):
        out = out.at[i * d_in:(i + 1) * d_in, i * d_out:(i + 1) * d_out].set(w)
    return out


def _select_hw():
    """Pick (pack, act_bf16) from the TPU generation.

    v6e / v7x (256-wide MXU, bf16 VPU+EUP): pack=8, bf16 SiLU.
    v5e and older (128-wide MXU, no bf16 EUP): pack=4, f32 SiLU.
    """
    try:
        kind = jax.devices()[0].device_kind.lower()
    except Exception:  # pragma: no cover - no device info, be conservative
        return 4, False
    if any(tag in kind for tag in ("v2", "v3", "v4", "v5")):
        return 4, False
    return 8, True


# ----------------------------------------------------------------------------
# Pallas kernel: the whole 7-layer MLP (matmul + bias + SiLU chain) for one
# tile of packed rows.  Weights are the packed block-diagonal bf16 versions,
# so the hot path is a chain of single-pass bf16 MXU matmuls with f32 accum.
# ----------------------------------------------------------------------------
def _mlp_kernel(act_bf16, x_ref, *refs):
    out_ref = refs[-1]
    wb_refs = refs[:-1]          # (w1, b1, w2, b2, ..., w7, b7)
    n_layers = len(wb_refs) // 2

    h = x_ref[...]
    for layer in range(n_layers):
        w = wb_refs[2 * layer][...]          # (in, out)  bf16 block-diag
        b = wb_refs[2 * layer + 1][...]      # (1, out)   f32
        # Pinned precision: bf16 inputs, f32 accumulate (single MXU pass).
        h = jnp.dot(h.astype(jnp.bfloat16), w,
                    preferred_element_type=jnp.float32) + b
        if layer != n_layers - 1:
            if act_bf16:
                # bf16 SiLU: sigmoid -> EUP (bf16), mul -> VPU (bf16).
                hb = h.astype(jnp.bfloat16)
                h = hb * jax.nn.sigmoid(hb)
            else:
                # v5e has no bf16 EUP: keep the activation in f32.
                h = h * jax.nn.sigmoid(h)
    out_ref[...] = h.astype(out_ref.dtype)


def _run_mlp(x_packed, weights, biases, *, tile_m, act_bf16):
    """x_packed: (m_pad, P*input_size); weights/biases: packed block-diag."""
    m_pad, in_w = x_packed.shape
    out_w = weights[-1].shape[1]
    assert m_pad % tile_m == 0  # guaranteed by the wrapper's tile selection

    in_specs = [pl.BlockSpec((tile_m, in_w), lambda i: (i, 0))]
    args = [x_packed]
    for w, b in zip(weights, biases):
        # Grid-invariant blocks (constant index_map): DMA'd once, reused.
        in_specs.append(pl.BlockSpec(w.shape, lambda i: (0, 0)))
        in_specs.append(pl.BlockSpec(b.shape, lambda i: (0, 0)))
        args.append(w)
        args.append(b)

    out_spec = pl.BlockSpec((tile_m, out_w), lambda i: (i, 0))

    return pl.pallas_call(
        partial(_mlp_kernel, act_bf16),
        out_shape=jax.ShapeDtypeStruct((m_pad, out_w), jnp.float32),
        grid_spec=pltpu.PrefetchScalarGridSpec(
            num_scalar_prefetch=0,
            grid=(m_pad // tile_m,),
            in_specs=in_specs,
            out_specs=out_spec,
        ),
        compiler_params=pltpu.CompilerParams(
            dimension_semantics=("parallel",),
            # Safe on all of v5e/v6e/v7x (v7x physical = 64 MiB); bumps v5e's
            # 16 MiB default so larger tiles don't trip the scoped limit.
            vmem_limit_bytes=48 * 1024 * 1024,
        ),
    )(*args)


# ----------------------------------------------------------------------------
# CGN module: parameter construction + jitted forward wrapper.
# ----------------------------------------------------------------------------
class CGN:
    # Hidden sizes of nn.Sequential in the reference module.
    _HIDDEN = (8, 16, 32, 64, 32, 16)

    def __init__(self, dim_u1, dim_z, key, *, pack=None, act_bf16=None):
        self.dim_u1 = dim_u1
        self.dim_z = dim_z
        self.input_size = 2
        self.output_size = self.input_size + self.input_size * dim_z

        hw_pack, hw_act = _select_hw()
        self.pack = hw_pack if pack is None else pack
        self.act_bf16 = hw_act if act_bf16 is None else act_bf16
        assert 128 % self.pack == 0

        # Per-token output width padded so pack * output_pad is a multiple of
        # 128 -> lane-dense output stores.  Padded lanes stay exactly zero
        # (zero weight columns + zero bias) and are sliced off under jit.
        self.output_pad = _round_up(self.output_size, 128 // self.pack)

        dims = (self.input_size,) + self._HIDDEN + (self.output_size,)
        keys = jax.random.split(key, 2 * (len(dims) - 1) + 2)
        k_iter = iter(keys)

        self.weights = []
        self.biases = []
        for d_in, d_out in zip(dims[:-1], dims[1:]):
            # PyTorch nn.Linear default init: U(-1/sqrt(in), 1/sqrt(in))
            bound = 1.0 / (d_in ** 0.5)
            w = jax.random.uniform(next(k_iter), (d_in, d_out),
                                   minval=-bound, maxval=bound,
                                   dtype=jnp.float32)
            b = jax.random.uniform(next(k_iter), (1, d_out),
                                   minval=-bound, maxval=bound,
                                   dtype=jnp.float32)
            self.weights.append(w)
            self.biases.append(b)

        # Packed (block-diagonal) weights, built once at init.  Stored bf16 so
        # the in-kernel matmuls are guaranteed single-pass; biases stay f32.
        pw, pb = [], []
        last = len(self.weights) - 1
        for i, (w, b) in enumerate(zip(self.weights, self.biases)):
            if i == last:
                w = jnp.zeros((w.shape[0], self.output_pad),
                              w.dtype).at[:, :self.output_size].set(w)
                b = jnp.zeros((1, self.output_pad),
                              b.dtype).at[:, :self.output_size].set(b)
            pw.append(_block_diag(w, self.pack).astype(jnp.bfloat16))
            pb.append(jnp.tile(b, (1, self.pack)).astype(jnp.float32))
        self.packed_weights = tuple(pw)
        self.packed_biases = tuple(pb)

        # f2_param = (1/sqrt(dim_z)) * rand(dim_z, 1); g2_param = (1/dim_z) * rand(dim_z, dim_z)
        self.f2_param = (1.0 / (dim_z ** 0.5)) * jax.random.uniform(
            next(k_iter), (dim_z, 1), dtype=jnp.float32)
        self.g2_param = (1.0 / dim_z) * jax.random.uniform(
            next(k_iter), (dim_z, dim_z), dtype=jnp.float32)

        # jit the full forward so pad / unpack / broadcast glue fuses with the
        # kernel's consumers (kills the standalone padded-output slice copy).
        self._forward = jax.jit(self._forward_impl)

    # ------------------------------------------------------------------ #
    def _forward_impl(self, packed_weights, packed_biases, f2_param, g2_param, x):
        batch_size = x.shape[0]
        P = self.pack

        # x.view(batch, -1, input_size) -> flatten tokens to rows.
        x3 = x.reshape(batch_size, -1, self.input_size)      # (B, T, 2)
        n_tokens = x3.shape[1]                                # = dim_u1 // 2
        n_rows = batch_size * n_tokens
        x_flat = x3.reshape(n_rows, self.input_size)

        # Pack P tokens per matmul row.
        n_pack = _cdiv(n_rows, P)
        out_w = P * self.output_pad

        # Per-tile row target from a VMEM byte budget: f32 output block
        # (double-buffered) dominates; keep it ~16 MiB so total footprint is
        # well under the 32 MiB scoped default / 48 MiB requested limit.
        bytes_per_row = (4 * out_w * 2            # f32 output, double-buffered
                         + 4 * P * 64             # widest f32 intermediate
                         + 2 * P * 64             # bf16 activation copy
                         + 4 * P * self.input_size * 2)
        target_rows = max(64, min(2048, (16 << 20) // bytes_per_row))

        # Tile selection: >= 2 grid steps (v7x megacore), <= 7 padded rows/tile.
        min_tiles = 2
        num_tiles = max(min_tiles, _cdiv(n_pack, target_rows))
        tile_m = _round_up(_cdiv(n_pack, num_tiles), 8)
        m_pad = tile_m * num_tiles

        x_pad = jnp.zeros((m_pad * P, self.input_size), x_flat.dtype)
        x_pad = x_pad.at[:n_rows].set(x_flat)
        x_packed = x_pad.reshape(m_pad, P * self.input_size)

        out_packed = _run_mlp(x_packed, packed_weights, packed_biases,
                              tile_m=tile_m, act_bf16=self.act_bf16)

        # Unpack: (m_pad, P*output_pad) -> (rows, output_pad) -> real tokens.
        # (Fused by XLA under jit; padded rows/lanes are never consumed.)
        out = (out_packed.reshape(m_pad * P, self.output_pad)
               [:n_rows, :self.output_size]
               .reshape(batch_size, n_tokens, self.output_size))

        f1 = out[:, :, :self.input_size].reshape(batch_size, self.dim_u1, 1)
        g1 = out[:, :, self.input_size:].reshape(batch_size, self.dim_u1,
                                                 self.dim_z)
        f2 = jnp.broadcast_to(f2_param[None], (batch_size, self.dim_z, 1))
        g2 = jnp.broadcast_to(g2_param[None], (batch_size, self.dim_z,
                                               self.dim_z))
        return [f1, g1, f2, g2]

    def __call__(self, x):
        return self._forward(self.packed_weights, self.packed_biases,
                             self.f2_param, self.g2_param, x)

    # Pure-JAX reference of the (unpacked) MLP, mimicking the kernel's
    # bf16-input / f32-accumulate precision, for a correctness check.
    def _mlp_ref(self, x_flat):
        h = x_flat
        n = len(self.weights)
        for i, (w, b) in enumerate(zip(self.weights, self.biases)):
            h = jnp.dot(h.astype(jnp.bfloat16), w.astype(jnp.bfloat16),
                        preferred_element_type=jnp.float32) + b
            if i != n - 1:
                if self.act_bf16:
                    hb = h.astype(jnp.bfloat16)
                    h = (hb * jax.nn.sigmoid(hb)).astype(jnp.float32)
                else:
                    h = h * jax.nn.sigmoid(h)
        return h


if __name__ == "__main__":
    # Small shapes consistent with the module: batch=2, dim_u1=32, dim_z=16.
    batch, dim_u1, dim_z = 2, 32, 16

    key = jax.random.PRNGKey(0)
    k_param, k_x = jax.random.split(key)

    model = CGN(dim_u1, dim_z, k_param)
    x = jax.random.normal(k_x, (batch, dim_u1), dtype=jnp.float32)

    f1, g1, f2, g2 = model(x)
    jax.block_until_ready((f1, g1, f2, g2))

    # Shape checks (match PyTorch forward).
    assert f1.shape == (batch, dim_u1, 1)
    assert g1.shape == (batch, dim_u1, dim_z)
    assert f2.shape == (batch, dim_z, 1)
    assert g2.shape == (batch, dim_z, dim_z)

    # Numerical check: packed Pallas MLP vs pure-JAX unpacked reference
    # (both use bf16 MXU inputs, so tolerance reflects bf16 rounding only).
    x_flat = x.reshape(batch * (dim_u1 // 2), 2)
    out_ref = model._mlp_ref(x_flat).reshape(batch, dim_u1 // 2, -1)
    f1_ref = out_ref[:, :, :2].reshape(batch, dim_u1, 1)
    g1_ref = out_ref[:, :, 2:].reshape(batch, dim_u1, dim_z)
    assert jnp.allclose(f1, f1_ref, atol=2e-2, rtol=2e-2)
    assert jnp.allclose(g1, g1_ref, atol=2e-2, rtol=2e-2)

    # f2 / g2 are parameter broadcasts.
    assert jnp.allclose(f2[0], model.f2_param)
    assert jnp.allclose(g2[-1], model.g2_param)

    print("KERNEL_OK")
</pallas_src>

<mosaic_0001>
module attributes {stable_mosaic.version = 11 : i64} {
  func.func @_mlp_kernel(%arg0: i32, %arg1: memref<8x16xf32, #tpu.memory_space<vmem>>, %arg2: memref<16x64xbf16, #tpu.memory_space<vmem>>, %arg3: memref<1x64xf32, #tpu.memory_space<vmem>>, %arg4: memref<64x128xbf16, #tpu.memory_space<vmem>>, %arg5: memref<1x128xf32, #tpu.memory_space<vmem>>, %arg6: memref<128x256xbf16, #tpu.memory_space<vmem>>, %arg7: memref<1x256xf32, #tpu.memory_space<vmem>>, %arg8: memref<256x512xbf16, #tpu.memory_space<vmem>>, %arg9: memref<1x512xf32, #tpu.memory_space<vmem>>, %arg10: memref<512x256xbf16, #tpu.memory_space<vmem>>, %arg11: memref<1x256xf32, #tpu.memory_space<vmem>>, %arg12: memref<256x128xbf16, #tpu.memory_space<vmem>>, %arg13: memref<1x128xf32, #tpu.memory_space<vmem>>, %arg14: memref<128x384xbf16, #tpu.memory_space<vmem>>, %arg15: memref<1x384xf32, #tpu.memory_space<vmem>>, %arg16: memref<8x384xf32, #tpu.memory_space<vmem>>) attributes {dimension_semantics = [#tpu.dimension_semantics<parallel>], iteration_bounds = array<i64: 2>, scalar_prefetch = 0 : i64, scratch_operands = 0 : i64, tpu.core_type = #tpu.core_type<tc>, window_params = [{transform_indices = @transform_0, window_bounds = array<i64: 8, 16>}, {pipeline_mode = #tpu.pipeline_mode<synchronous>, transform_indices = @transform_1, window_bounds = array<i64: 16, 64>}, {pipeline_mode = #tpu.pipeline_mode<synchronous>, transform_indices = @transform_2, window_bounds = array<i64: 1, 64>}, {pipeline_mode = #tpu.pipeline_mode<synchronous>, transform_indices = @transform_3, window_bounds = array<i64: 64, 128>}, {pipeline_mode = #tpu.pipeline_mode<synchronous>, transform_indices = @transform_4, window_bounds = array<i64: 1, 128>}, {pipeline_mode = #tpu.pipeline_mode<synchronous>, transform_indices = @transform_5, window_bounds = array<i64: 128, 256>}, {pipeline_mode = #tpu.pipeline_mode<synchronous>, transform_indices = @transform_6, window_bounds = array<i64: 1, 256>}, {pipeline_mode = #tpu.pipeline_mode<synchronous>, transform_indices = @transform_7, window_bounds = array<i64: 256, 512>}, {pipeline_mode = #tpu.pipeline_mode<synchronous>, transform_indices = @transform_8, window_bounds = array<i64: 1, 512>}, {pipeline_mode = #tpu.pipeline_mode<synchronous>, transform_indices = @transform_9, window_bounds = array<i64: 512, 256>}, {pipeline_mode = #tpu.pipeline_mode<synchronous>, transform_indices = @transform_10, window_bounds = array<i64: 1, 256>}, {pipeline_mode = #tpu.pipeline_mode<synchronous>, transform_indices = @transform_11, window_bounds = array<i64: 256, 128>}, {pipeline_mode = #tpu.pipeline_mode<synchronous>, transform_indices = @transform_12, window_bounds = array<i64: 1, 128>}, {pipeline_mode = #tpu.pipeline_mode<synchronous>, transform_indices = @transform_13, window_bounds = array<i64: 128, 384>}, {pipeline_mode = #tpu.pipeline_mode<synchronous>, transform_indices = @transform_14, window_bounds = array<i64: 1, 384>}, {transform_indices = @transform_15, window_bounds = array<i64: 8, 384>}]} {
    %c0 = arith.constant 0 : index
    %c0_0 = arith.constant 0 : index
    %0 = vector.load %arg1[%c0, %c0_0] : memref<8x16xf32, #tpu.memory_space<vmem>>, vector<8x16xf32>
    %c0_1 = arith.constant 0 : index
    %c0_2 = arith.constant 0 : index
    %1 = vector.load %arg2[%c0_1, %c0_2] : memref<16x64xbf16, #tpu.memory_space<vmem>>, vector<16x64xbf16>
    %c0_3 = arith.constant 0 : index
    %c0_4 = arith.constant 0 : index
    %2 = vector.load %arg3[%c0_3, %c0_4] : memref<1x64xf32, #tpu.memory_space<vmem>>, vector<1x64xf32>
    %3 = arith.truncf %0 : vector<8x16xf32> to vector<8x16xbf16>
    %cst = arith.constant dense<0.000000e+00> : vector<8x64xf32>
    %4 = tpu.matmul %3, %1, %cst {dimension_numbers = #tpu.dot_dimension_numbers<[1], [0], [0], [1], [0, 0, 1, 1], [], []>} : vector<8x16xbf16>, vector<16x64xbf16>, vector<8x64xf32> -> vector<8x64xf32>
    %5 = vector.broadcast %2 : vector<1x64xf32> to vector<8x64xf32>
    %6 = arith.addf %4, %5 : vector<8x64xf32>
    %7 = arith.truncf %6 : vector<8x64xf32> to vector<8x64xbf16>
    %8 = arith.negf %7 : vector<8x64xbf16>
    %9 = math.exp %8 : vector<8x64xbf16>
    %cst_5 = arith.constant 1.000000e+00 : bf16
    %10 = vector.broadcast %cst_5 : bf16 to vector<8x64xbf16>
    %11 = arith.addf %10, %9 : vector<8x64xbf16>
    %12 = arith.divf %10, %11 : vector<8x64xbf16>
    %13 = arith.mulf %7, %12 : vector<8x64xbf16>
    %c0_6 = arith.constant 0 : index
    %c0_7 = arith.constant 0 : index
    %14 = vector.load %arg4[%c0_6, %c0_7] : memref<64x128xbf16, #tpu.memory_space<vmem>>, vector<64x128xbf16>
    %c0_8 = arith.constant 0 : index
    %c0_9 = arith.constant 0 : index
    %15 = vector.load %arg5[%c0_8, %c0_9] : memref<1x128xf32, #tpu.memory_space<vmem>>, vector<1x128xf32>
    %cst_10 = arith.constant dense<0.000000e+00> : vector<8x128xf32>
    %16 = tpu.matmul %13, %14, %cst_10 {dimension_numbers = #tpu.dot_dimension_numbers<[1], [0], [0], [1], [0, 0, 1, 1], [], []>} : vector<8x64xbf16>, vector<64x128xbf16>, vector<8x128xf32> -> vector<8x128xf32>
    %17 = vector.broadcast %15 : vector<1x128xf32> to vector<8x128xf32>
    %18 = arith.addf %16, %17 : vector<8x128xf32>
    %19 = arith.truncf %18 : vector<8x128xf32> to vector<8x128xbf16>
    %20 = arith.negf %19 : vector<8x128xbf16>
    %21 = math.exp %20 : vector<8x128xbf16>
    %cst_11 = arith.constant 1.000000e+00 : bf16
    %22 = vector.broadcast %cst_11 : bf16 to vector<8x128xbf16>
    %23 = arith.addf %22, %21 : vector<8x128xbf16>
    %24 = arith.divf %22, %23 : vector<8x128xbf16>
    %25 = arith.mulf %19, %24 : vector<8x128xbf16>
    %c0_12 = arith.constant 0 : index
    %c0_13 = arith.constant 0 : index
    %26 = vector.load %arg6[%c0_12, %c0_13] : memref<128x256xbf16, #tpu.memory_space<vmem>>, vector<128x256xbf16>
    %c0_14 = arith.constant 0 : index
    %c0_15 = arith.constant 0 : index
    %27 = vector.load %arg7[%c0_14, %c0_15] : memref<1x256xf32, #tpu.memory_space<vmem>>, vector<1x256xf32>
    %cst_16 = arith.constant dense<0.000000e+00> : vector<8x256xf32>
    %28 = tpu.matmul %25, %26, %cst_16 {dimension_numbers = #tpu.dot_dimension_numbers<[1], [0], [0], [1], [0, 0, 1, 1], [], []>} : vector<8x128xbf16>, vector<128x256xbf16>, vector<8x256xf32> -> vector<8x256xf32>
    %29 = vector.broadcast %27 : vector<1x256xf32> to vector<8x256xf32>
    %30 = arith.addf %28, %29 : vector<8x256xf32>
    %31 = arith.truncf %30 : vector<8x256xf32> to vector<8x256xbf16>
    %32 = arith.negf %31 : vector<8x256xbf16>
    %33 = math.exp %32 : vector<8x256xbf16>
    %cst_17 = arith.constant 1.000000e+00 : bf16
    %34 = vector.broadcast %cst_17 : bf16 to vector<8x256xbf16>
    %35 = arith.addf %34, %33 : vector<8x256xbf16>
    %36 = arith.divf %34, %35 : vector<8x256xbf16>
    %37 = arith.mulf %31, %36 : vector<8x256xbf16>
    %c0_18 = arith.constant 0 : index
    %c0_19 = arith.constant 0 : index
    %38 = vector.load %arg8[%c0_18, %c0_19] : memref<256x512xbf16, #tpu.memory_space<vmem>>, vector<256x512xbf16>
    %c0_20 = arith.constant 0 : index
    %c0_21 = arith.constant 0 : index
    %39 = vector.load %arg9[%c0_20, %c0_21] : memref<1x512xf32, #tpu.memory_space<vmem>>, vector<1x512xf32>
    %cst_22 = arith.constant dense<0.000000e+00> : vector<8x512xf32>
    %40 = tpu.matmul %37, %38, %cst_22 {dimension_numbers = #tpu.dot_dimension_numbers<[1], [0], [0], [1], [0, 0, 1, 1], [], []>} : vector<8x256xbf16>, vector<256x512xbf16>, vector<8x512xf32> -> vector<8x512xf32>
    %41 = vector.broadcast %39 : vector<1x512xf32> to vector<8x512xf32>
    %42 = arith.addf %40, %41 : vector<8x512xf32>
    %43 = arith.truncf %42 : vector<8x512xf32> to vector<8x512xbf16>
    %44 = arith.negf %43 : vector<8x512xbf16>
    %45 = math.exp %44 : vector<8x512xbf16>
    %cst_23 = arith.constant 1.000000e+00 : bf16
    %46 = vector.broadcast %cst_23 : bf16 to vector<8x512xbf16>
    %47 = arith.addf %46, %45 : vector<8x512xbf16>
    %48 = arith.divf %46, %47 : vector<8x512xbf16>
    %49 = arith.mulf %43, %48 : vector<8x512xbf16>
    %c0_24 = arith.constant 0 : index
    %c0_25 = arith.constant 0 : index
    %50 = vector.load %arg10[%c0_24, %c0_25] : memref<512x256xbf16, #tpu.memory_space<vmem>>, vector<512x256xbf16>
    %c0_26 = arith.constant 0 : index
    %c0_27 = arith.constant 0 : index
    %51 = vector.load %arg11[%c0_26, %c0_27] : memref<1x256xf32, #tpu.memory_space<vmem>>, vector<1x256xf32>
    %cst_28 = arith.constant dense<0.000000e+00> : vector<8x256xf32>
    %52 = tpu.matmul %49, %50, %cst_28 {dimension_numbers = #tpu.dot_dimension_numbers<[1], [0], [0], [1], [0, 0, 1, 1], [], []>} : vector<8x512xbf16>, vector<512x256xbf16>, vector<8x256xf32> -> vector<8x256xf32>
    %53 = vector.broadcast %51 : vector<1x256xf32> to vector<8x256xf32>
    %54 = arith.addf %52, %53 : vector<8x256xf32>
    %55 = arith.truncf %54 : vector<8x256xf32> to vector<8x256xbf16>
    %56 = arith.negf %55 : vector<8x256xbf16>
    %57 = math.exp %56 : vector<8x256xbf16>
    %cst_29 = arith.constant 1.000000e+00 : bf16
    %58 = vector.broadcast %cst_29 : bf16 to vector<8x256xbf16>
    %59 = arith.addf %58, %57 : vector<8x256xbf16>
    %60 = arith.divf %58, %59 : vector<8x256xbf16>
    %61 = arith.mulf %55, %60 : vector<8x256xbf16>
    %c0_30 = arith.constant 0 : index
    %c0_31 = arith.constant 0 : index
    %62 = vector.load %arg12[%c0_30, %c0_31] : memref<256x128xbf16, #tpu.memory_space<vmem>>, vector<256x128xbf16>
    %c0_32 = arith.constant 0 : index
    %c0_33 = arith.constant 0 : index
    %63 = vector.load %arg13[%c0_32, %c0_33] : memref<1x128xf32, #tpu.memory_space<vmem>>, vector<1x128xf32>
    %cst_34 = arith.constant dense<0.000000e+00> : vector<8x128xf32>
    %64 = tpu.matmul %61, %62, %cst_34 {dimension_numbers = #tpu.dot_dimension_numbers<[1], [0], [0], [1], [0, 0, 1, 1], [], []>} : vector<8x256xbf16>, vector<256x128xbf16>, vector<8x128xf32> -> vector<8x128xf32>
    %65 = vector.broadcast %63 : vector<1x128xf32> to vector<8x128xf32>
    %66 = arith.addf %64, %65 : vector<8x128xf32>
    %67 = arith.truncf %66 : vector<8x128xf32> to vector<8x128xbf16>
    %68 = arith.negf %67 : vector<8x128xbf16>
    %69 = math.exp %68 : vector<8x128xbf16>
    %cst_35 = arith.constant 1.000000e+00 : bf16
    %70 = vector.broadcast %cst_35 : bf16 to vector<8x128xbf16>
    %71 = arith.addf %70, %69 : vector<8x128xbf16>
    %72 = arith.divf %70, %71 : vector<8x128xbf16>
    %73 = arith.mulf %67, %72 : vector<8x128xbf16>
    %c0_36 = arith.constant 0 : index
    %c0_37 = arith.constant 0 : index
    %74 = vector.load %arg14[%c0_36, %c0_37] : memref<128x384xbf16, #tpu.memory_space<vmem>>, vector<128x384xbf16>
    %c0_38 = arith.constant 0 : index
    %c0_39 = arith.constant 0 : index
    %75 = vector.load %arg15[%c0_38, %c0_39] : memref<1x384xf32, #tpu.memory_space<vmem>>, vector<1x384xf32>
    %cst_40 = arith.constant dense<0.000000e+00> : vector<8x384xf32>
    %76 = tpu.matmul %73, %74, %cst_40 {dimension_numbers = #tpu.dot_dimension_numbers<[1], [0], [0], [1], [0, 0, 1, 1], [], []>} : vector<8x128xbf16>, vector<128x384xbf16>, vector<8x384xf32> -> vector<8x384xf32>
    %77 = vector.broadcast %75 : vector<1x384xf32> to vector<8x384xf32>
    %78 = arith.addf %76, %77 : vector<8x384xf32>
    %c0_41 = arith.constant 0 : index
    %c0_42 = arith.constant 0 : index
    %79 = vector.load %arg16[%c0_41, %c0_42] : memref<8x384xf32, #tpu.memory_space<vmem>>, vector<8x384xf32>
    tpu.vector_store %arg16[%c0_41, %c0_42], %78 {strides = array<i32>} : memref<8x384xf32, #tpu.memory_space<vmem>>, vector<8x384xf32>,
    return
  }
  func.func @transform_0(%arg0: i32) -> (i32, i32) {
    %c0_i32 = arith.constant 0 : i32
    %c0_i32_0 = arith.constant 0 : i32
    return %arg0, %c0_i32 : i32, i32
  }
  func.func @transform_1(%arg0: i32) -> (i32, i32) {
    %c0_i32 = arith.constant 0 : i32
    %c0_i32_0 = arith.constant 0 : i32
    %c0_i32_1 = arith.constant 0 : i32
    return %c0_i32, %c0_i32_0 : i32, i32
  }
  func.func @transform_2(%arg0: i32) -> (i32, i32) {
    %c0_i32 = arith.constant 0 : i32
    %c0_i32_0 = arith.constant 0 : i32
    %c0_i32_1 = arith.constant 0 : i32
    return %c0_i32, %c0_i32_0 : i32, i32
  }
  func.func @transform_3(%arg0: i32) -> (i32, i32) {
    %c0_i32 = arith.constant 0 : i32
    %c0_i32_0 = arith.constant 0 : i32
    %c0_i32_1 = arith.constant 0 : i32
    return %c0_i32, %c0_i32_0 : i32, i32
  }
  func.func @transform_4(%arg0: i32) -> (i32, i32) {
    %c0_i32 = arith.constant 0 : i32
    %c0_i32_0 = arith.constant 0 : i32
    %c0_i32_1 = arith.constant 0 : i32
    return %c0_i32, %c0_i32_0 : i32, i32
  }
  func.func @transform_5(%arg0: i32) -> (i32, i32) {
    %c0_i32 = arith.constant 0 : i32
    %c0_i32_0 = arith.constant 0 : i32
    %c0_i32_1 = arith.constant 0 : i32
    return %c0_i32, %c0_i32_0 : i32, i32
  }
  func.func @transform_6(%arg0: i32) -> (i32, i32) {
    %c0_i32 = arith.constant 0 : i32
    %c0_i32_0 = arith.constant 0 : i32
    %c0_i32_1 = arith.constant 0 : i32
    return %c0_i32, %c0_i32_0 : i32, i32
  }
  func.func @transform_7(%arg0: i32) -> (i32, i32) {
    %c0_i32 = arith.constant 0 : i32
    %c0_i32_0 = arith.constant 0 : i32
    %c0_i32_1 = arith.constant 0 : i32
    return %c0_i32, %c0_i32_0 : i32, i32
  }
  func.func @transform_8(%arg0: i32) -> (i32, i32) {
    %c0_i32 = arith.constant 0 : i32
    %c0_i32_0 = arith.constant 0 : i32
    %c0_i32_1 = arith.constant 0 : i32
    return %c0_i32, %c0_i32_0 : i32, i32
  }
  func.func @transform_9(%arg0: i32) -> (i32, i32) {
    %c0_i32 = arith.constant 0 : i32
    %c0_i32_0 = arith.constant 0 : i32
    %c0_i32_1 = arith.constant 0 : i32
    return %c0_i32, %c0_i32_0 : i32, i32
  }
  func.func @transform_10(%arg0: i32) -> (i32, i32) {
    %c0_i32 = arith.constant 0 : i32
    %c0_i32_0 = arith.constant 0 : i32
    %c0_i32_1 = arith.constant 0 : i32
    return %c0_i32, %c0_i32_0 : i32, i32
  }
  func.func @transform_11(%arg0: i32) -> (i32, i32) {
    %c0_i32 = arith.constant 0 : i32
    %c0_i32_0 = arith.constant 0 : i32
    %c0_i32_1 = arith.constant 0 : i32
    return %c0_i32, %c0_i32_0 : i32, i32
  }
  func.func @transform_12(%arg0: i32) -> (i32, i32) {
    %c0_i32 = arith.constant 0 : i32
    %c0_i32_0 = arith.constant 0 : i32
    %c0_i32_1 = arith.constant 0 : i32
    return %c0_i32, %c0_i32_0 : i32, i32
  }
  func.func @transform_13(%arg0: i32) -> (i32, i32) {
    %c0_i32 = arith.constant 0 : i32
    %c0_i32_0 = arith.constant 0 : i32
    %c0_i32_1 = arith.constant 0 : i32
    return %c0_i32, %c0_i32_0 : i32, i32
  }
  func.func @transform_14(%arg0: i32) -> (i32, i32) {
    %c0_i32 = arith.constant 0 : i32
    %c0_i32_0 = arith.constant 0 : i32
    %c0_i32_1 = arith.constant 0 : i32
    return %c0_i32, %c0_i32_0 : i32, i32
  }
  func.func @transform_15(%arg0: i32) -> (i32, i32) {
    %c0_i32 = arith.constant 0 : i32
    %c0_i32_0 = arith.constant 0 : i32
    return %arg0, %c0_i32 : i32, i32
  }
}

</mosaic_0001>

<bundles_post_ra>
// kernel: _forward_impl.1
= control target key start
LH: loop header
LB: loop body
LE: loop exit
PB: predicated region body
PF: predicated region fallthrough
CT: control target
= control target key end

     0   :  { %s4091_s0 = inlined_call_operand.vmem [shape: f32[16,16], index: 0, kind: input, shape index: {}]   ;;  %s4092_s1 = inlined_call_operand.vmem [shape: bf16[16,64], index: 1, kind: input, shape index: {}]   ;;  %s4093_s2 = inlined_call_operand.vmem [shape: f32[1,64], index: 2, kind: input, shape index: {}]   ;;  %s4094_s3 = inlined_call_operand.hbm [shape: bf16[64,128], index: 3, kind: input, shape index: {}]   ;;  %s4095_s4 = inlined_call_operand.vmem [shape: f32[1,128], index: 4, kind: input, shape index: {}]   ;;  %s4096_s5 = inlined_call_operand.vmem [shape: bf16[128,256], index: 5, kind: input, shape index: {}]   ;;  %s4097_s6 = inlined_call_operand.vmem [shape: f32[1,256], index: 6, kind: input, shape index: {}]   ;;  %s4098_s7 = inlined_call_operand.hbm [shape: bf16[256,512], index: 7, kind: input, shape index: {}]   ;;  %s4099_s8 = inlined_call_operand.vmem [shape: f32[1,512], index: 8, kind: input, shape index: {}]   ;;  %s4100_s9 = inlined_call_operand.hbm [shape: bf16[512,256], index: 9, kind: input, shape index: {}]   ;;  %s4101_s10 = inlined_call_operand.vmem [shape: f32[1,256], index: 10, kind: input, shape index: {}]   ;;  %s4102_s11 = inlined_call_operand.hbm [shape: bf16[256,128], index: 11, kind: input, shape index: {}]   ;;  %s4103_s12 = inlined_call_operand.vmem [shape: f32[1,128], index: 12, kind: input, shape index: {}]   ;;  %s4104_s13 = inlined_call_operand.vmem [shape: bf16[128,384], index: 13, kind: input, shape index: {}]   ;;  %s4105_s14 = inlined_call_operand.vmem [shape: f32[1,384], index: 14, kind: input, shape index: {}]   ;;  %s4106_s15 = inlined_call_operand.vmem [shape: f32[16,384], index: 15, kind: output, shape index: {}]  }
   0x1   :  { %4108 = sst [smem:[#allocation13_spill]] %s4094_s3 }
   0x2   :  { %4109 = sst [smem:[#allocation14_spill]] %s4098_s7 }
   0x3   :  { %4110 = sst [smem:[#allocation15_spill]] %s4103_s12 }
   0x4   :  { %4111 = sst [smem:[#allocation16_spill]] %s4105_s14 }
   0x5   :  { %4112 = sst [smem:[#allocation17_spill]] %s4106_s15 }
   0x6   :  { %20 = vsyncpa [#allocation3], 0 }
   0x7   :  { %21 = vsyncpa [#allocation5], 0 }
   0x8   :  { %22 = vsyncpa [#allocation8], 0  ;;  %s3712_s18 = smov 0  }
   0x9 LB: > { %4113 = sst [smem:[#allocation12_spill]] %s3619_s18  ;;  %s3721_s22 = sadd.s32 4294967295, %s3619_s18   ;;  %s3619_s18 = sphi %s3712_s18, %s28_s18  }
   0xa   : > { %s4114_s7 = sld [smem:[#allocation14_spill]]  ;;  %p2409_p0 = scmp.ge.s32.totalorder %s3619_s18, 1 }
   0xb   : > { %p379_p1 = scmp.lt.s32.totalorder %s3619_s18, 3  ;;  %p3401_p2 = scmp.eq.s32.totalorder %s3721_s22, 0 }
   0xc   : > { %s3621_s24 = smov [#allocation4]   ;;  %s4116_s3 = sld [smem:[#allocation13_spill]] }
   0xd   : > { %p3726_p3 = pnand %p2409_p0, %p379_p1  ;;  %s421_s25 = sshll.u32 %s3621_s24, 4  ;;  %s422_s25 = int_to_ptr.vmem [resolvable:$true] %s421_s25 }
   0xe   : > { %s3622_s30 = smov [#allocation2]   ;;  %s3623_s17 = smov 256  }
   0xf   : > { %p3388_p4 = pneg %p3726_p3  ;;  %s398_s16 = sshll.u32 %s3622_s30, 4  ;;  %s399_s16 = int_to_ptr.vmem [resolvable:$true] %s398_s16 }
  0x10   : > { %s419_s21 = sshll.u32 %s4114_s7, 4  ;;  %s3624_s19 = smov 16   ;;  %s420_s21 = int_to_ptr.hbm [resolvable:$true] %s419_s21 }
  0x11   : > { %p3737_p5 = pnand %p3401_p2, %p3388_p4  ;;  %s436_s26 = sshll.u32 %s4100_s9, 4  ;;  %s437_s26 = int_to_ptr.hbm [resolvable:$true] %s436_s26 }
  0x12   : > { %s396_s28 = sshll.u32 %s4116_s3, 4  ;;  %s3625_s27 = smov 64   ;;  %s397_s28 = int_to_ptr.hbm [resolvable:$true] %s396_s28 }
  0x13   : > { %3394 = dma.hbm_to_vmem [thread:$0]  (!%p3737_p5), %s420_s21, 8192, %s422_s25, [#allocation5], %s3623_s17, %s3623_s17, %s3624_s19  }
  0x14   : > { %s3626_s3 = smov 4   ;;  %s3627_s7 = smov [#allocation6]  }
  0x15   : > { %3391 = dma.hbm_to_vmem [thread:$0]  (!%p3737_p5), %s397_s28, 512, %s399_s16, [#allocation3], %s3625_s27, %s3625_s27, %s3626_s3  }
  0x16   : > { %s438_s18 = sshll.u32 %s3627_s7, 4  ;;  %s3628_s15 = smov 128   ;;  %s439_s18 = int_to_ptr.vmem [resolvable:$true] %s438_s18 }
  0x17   : > { %s3629_s30 = smov 8   ;;  %s453_s21 = sshll.u32 %s4102_s11, 4  ;;  %s454_s21 = int_to_ptr.hbm [resolvable:$true] %s453_s21 }
  0x18   : > { %3397 = dma.hbm_to_vmem [thread:$0]  (!%p3737_p5), %s437_s26, 8192, %s439_s18, [#allocation5], %s3628_s15, %s3628_s15, %s3629_s30  }
  0x19   : > { %s3630_s25 = smov [#allocation7]   ;;  %487 = sbr.rel (%p3726_p3) target bundleno = 1269 (0x4f5), region = 80 }
  0x1a   : > { %s455_s17 = sshll.u32 %s3630_s25, 4  ;;  %s456_s17 = int_to_ptr.vmem [resolvable:$true] %s455_s17 }
  0x1b   : > { %3400 = dma.hbm_to_vmem [thread:$0]  (!%p3737_p5), %s454_s21, 2048, %s456_s17, [#allocation8], %s3625_s27, %s3625_s27, %s3626_s3  }
  0x1e   : > { %3606 = dma.done.wait (%p3401_p2), [#allocation3], 512  }
  0x1f   : > { %3608 = vsyncadd (%p3401_p2), [#allocation3], 4294966784 }
  0x20   : > { %3610 = dma.done.wait (%p3401_p2), [#allocation5], 16384  }
  0x21   : > { %3612 = vsyncadd (%p3401_p2), [#allocation5], 4294950912 }
  0x22   : > { %3614 = dma.done.wait (%p3401_p2), [#allocation8], 2048  }
  0x23   : > { %3616 = vsyncadd (%p3401_p2), [#allocation8], 4294965248  ;;  %p550_p6 = scmp.lt.s32.totalorder %s3721_s22, 1  ;;  %v3182_v0 = vld [vmem:[%s4092_s1] sm:$0xff]  ;;  %vm575_vm0 = vcmask 130048   ;;  %v3186_v4 = vld [vmem:[#allocation2 + $0x18] sm:$0xff] }
  0x24   : > { %586 = vmatpush.bf16.msra.mxu1 %v3182_v0  ;;  %v3428_v3 = vld [vmem:[%s4093_s2] ss:$0 sm:$0xff]  ;;  %v3185_v7 = vld [vmem:[#allocation2 + $0x10] sm:$0xff]  ;;  %v3184_v10 = vld [vmem:[#allocation2 + $0x8] sm:$0xff]  ;;  %v3631_v22 = vmov 1065369472  }
  0x25   : > { %s4123_s22 = smov (!%p550_p6, %s3721_s22), 1  ;;  %v3183_v14 = vld [vmem:[#allocation2] sm:$0xff]  ;;  %v3783_v23 = vunpack.c.h.bf16 %v3631_v22  ;;  %v3785_v24 = vunpack.c.l.bf16 %v3631_v22  ;;  %vm650_vm1 = vcmask 523264   ;;  %v2502_v34 = vld [vmem:[%s4096_s5 + $0x70] sm:$0xf]  ;;  %s4118_s21 = sld [smem:[#allocation15_spill]] }
  0x26   : > { %s2420_s3 = sshll.u32 %s4123_s22, 3  ;;  %v3202_v35 = vld [vmem:[%s4096_s5 + $0x74] sm:$0xf0]  ;;  %v3201_v36 = vld [vmem:[%s4096_s5 + $0x74] sm:$0xf]  ;;  %s4119_s19 = sld [smem:[#allocation16_spill]] }
  0x27   : > { %s553_s14 = scalar_lea.vmem %s4091_s0, %s2420_s3  ;;  %v2503_v37 = vor.u32 %v3202_v35, %v2502_v34  ;;  %v2504_v38 = vld [vmem:[%s4096_s5 + $0x78] sm:$0xf0]  ;;  %v2494_v40 = vld [vmem:[%s4096_s5 + $0x60] sm:$0xf]  ;;  %v3200_v41 = vld [vmem:[%s4096_s5 + $0x64] sm:$0xf0] }
  0x28   : > { %v561_v1 = vld [vmem:[%s553_s14] sm:$0xff]  ;;  %658 = vmatpush.bf16.msrb.mxu1 %v3186_v4  ;;  %v2507_v39 = vor.u32 %v3201_v36, %v2504_v38  ;;  %v2495_v43 = vor.u32 %v3200_v41, %v2494_v40  ;;  %v2496_v44 = vld [vmem:[%s4096_s5 + $0x68] sm:$0xf0]  ;;  %v2486_v46 = vld [vmem:[%s4096_s5 + $0x50] sm:$0xf]  ;;  %s3371_s20 = smul.u32 24, %s4123_s22 }
  0x29   : > { %v565_v2 = vpack.c.bf16 %v561_v1, %v561_v1  ;;  %789 = vmatpush.bf16.msra.mxu2 %v2503_v37  ;;  %v3199_v42 = vld [vmem:[%s4096_s5 + $0x64] sm:$0xf]  ;;  %v3198_v47 = vld [vmem:[%s4096_s5 + $0x54] sm:$0xf0]  ;;  %v3197_v48 = vld [vmem:[%s4096_s5 + $0x54] sm:$0xf] }
  0x2a   : > { %802 = vmatpush.bf16.msra.mxu3 %v2507_v39  ;;  %v2499_v45 = vor.u32 %v3199_v42, %v2496_v44  ;;  %v2487_v49 = vor.u32 %v3198_v47, %v2486_v46  ;;  %v2488_v50 = vld [vmem:[%s4096_s5 + $0x58] sm:$0xf0]  ;;  %v2478_v52 = vld [vmem:[%s4096_s5 + $0x40] sm:$0xf]  ;;  %v3196_v53 = vld [vmem:[%s4096_s5 + $0x44] sm:$0xf0] }
  0x2b   : > { %2426 = vmatmul.msk.bf16.vlgmr.msra.gmra.mxu1 %vm575_vm0, %v565_v2  ;;  %v2491_v51 = vor.u32 %v3197_v48, %v2488_v50  ;;  %v3195_v54 = vld [vmem:[%s4096_s5 + $0x44] sm:$0xf]  ;;  %v2479_v55 = vor.u32 %v3196_v53, %v2478_v52  ;;  %v2480_v56 = vld [vmem:[%s4096_s5 + $0x48] sm:$0xf0]  ;;  %v3429_v58 = vld [vmem:[%s4095_s4] ss:$0 sm:$0xff] }
  0x2c   : > { %659 = vmatpush.bf16.msrb.mxu1 %v3185_v7  ;;  %v2483_v57 = vor.u32 %v3195_v54, %v2480_v56  ;;  %v2470_v59 = vld [vmem:[%s4096_s5 + $0x30] sm:$0xf]  ;;  %v3194_v60 = vld [vmem:[%s4096_s5 + $0x34] sm:$0xf0]  ;;  %v3193_v61 = vld [vmem:[%s4096_s5 + $0x34] sm:$0xf] }
  0x2d   : > { %790 = vmatpush.bf16.msra.mxu2 %v2495_v43  ;;  %v2471_v62 = vor.u32 %v3194_v60, %v2470_v59  ;;  %v2472_v63 = vld [vmem:[%s4096_s5 + $0x38] sm:$0xf0]  ;;  %v2462_v0 = vld [vmem:[%s4096_s5 + $0x20] sm:$0xf]  ;;  %v3192_v1 = vld [vmem:[%s4096_s5 + $0x24] sm:$0xf0] }
  0x2e   : > { %803 = vmatpush.bf16.msra.mxu3 %v2499_v45  ;;  %v2475_v2 = vor.u32 %v3193_v61, %v2472_v63  ;;  %v2464_v4 = vld [vmem:[%s4096_s5 + $0x28] sm:$0xf0]  ;;  %v2622_v44 = vld [vmem:[#allocation4 + $0xe0] sm:$0xf]  ;;  %v3233_v45 = vld [vmem:[#allocation4 + $0xec] sm:$0xf0] }
  0x2f   : > { %v2623_v46 = vor.u32 %v3233_v45, %v2622_v44  ;;  %v2750_v47 = vld [vmem:[#allocation4 + $0x1e0] sm:$0xf]  ;;  %v3265_v48 = vld [vmem:[#allocation4 + $0x1ec] sm:$0xf0]  ;;  %v3263_v52 = vld [vmem:[#allocation4 + $0x1e4] sm:$0xf] }
  0x30   : > { %660 = vmatpush.bf16.msrb.mxu1 %v3184_v10  ;;  %v2751_v50 = vor.u32 %v3265_v48, %v2750_v47  ;;  %v2752_v53 = vld [vmem:[#allocation4 + $0x1f0] sm:$0xf0]  ;;  %v2606_v56 = vld [vmem:[#allocation4 + $0xc0] sm:$0xf]  ;;  %v3261_v60 = vld [vmem:[#allocation4 + $0x1cc] sm:$0xf0] }
  0x31   : > { %791 = vmatpush.bf16.msra.mxu2 %v2487_v49  ;;  %v3231_v49 = vld [vmem:[#allocation4 + $0xe4] sm:$0xf]  ;;  %1238 = vmatpush.bf16.msra.mxu0 %v2623_v46  ;;  %v3213_v44 = vld [vmem:[#allocation4 + $0x4c] sm:$0xf0]  ;;  %v2670_v45 = vld [vmem:[#allocation4 + $0x140] sm:$0xf] }
  0x32   : > { %804 = vmatpush.bf16.msra.mxu3 %v2491_v51  ;;  %v2624_v51 = vld [vmem:[#allocation4 + $0xf0] sm:$0xf0]  ;;  %v3227_v61 = vld [vmem:[#allocation4 + $0xc4] sm:$0xf]  ;;  %v3245_v47 = vld [vmem:[#allocation4 + $0x14c] sm:$0xf0] }
  0x33   : > { %v2627_v54 = vor.u32 %v3231_v49, %v2624_v51  ;;  %v3211_v48 = vld [vmem:[#allocation4 + $0x44] sm:$0xf]  ;;  %v2544_v49 = vld [vmem:[#allocation4 + $0x50] sm:$0xf0]  ;;  %s4120_s27 = sld [smem:[#allocation17_spill]] }
  0x34   : > { %661 = vmatpush.bf16.msrb.mxu1 %v3183_v14  ;;  %v2547_v51 = vor.u32 %v3211_v48, %v2544_v49  ;;  %v3226_v48 = vld [vmem:[#allocation4 + $0xb4] sm:$0xf0]  ;;  %v2726_v49 = vld [vmem:[#allocation4 + $0x1a8] sm:$0xf] }
  0x35   : > { %792 = vmatpush.bf16.msra.mxu2 %v2479_v55  ;;  %v2755_v55 = vor.u32 %v3263_v52, %v2752_v53  ;;  %v3243_v52 = vld [vmem:[#allocation4 + $0x144] sm:$0xf]  ;;  %v2672_v53 = vld [vmem:[#allocation4 + $0x150] sm:$0xf0] }
  0x36   : > { %805 = vmatpush.bf16.msra.mxu3 %v2483_v57  ;;  %v3229_v57 = vld [vmem:[#allocation4 + $0xcc] sm:$0xf0] }
  0x37   : > { %v2607_v59 = vor.u32 %v3229_v57, %v2606_v56  ;;  %v2675_v56 = vor.u32 %v3243_v52, %v2672_v53  ;;  %v2526_v57 = vld [vmem:[#allocation4 + $0x20] sm:$0xf]  ;;  %v3224_v53 = vld [vmem:[#allocation4 + $0xac] sm:$0xf] }
  0x38   : > { %1251 = vmatpush.bf16.msra.mxu1 %v2751_v50  ;;  %v2671_v50 = vor.u32 %v3245_v47, %v2670_v45  ;;  %v2598_v45 = vld [vmem:[#allocation4 + $0xa8] sm:$0xf] }
  0x39   : > { %793 = vmatpush.bf16.msra.mxu2 %v2471_v62  ;;  %v2608_v62 = vld [vmem:[#allocation4 + $0xd0] sm:$0xf0]  ;;  %1239 = vmatpush.bf16.msra.mxu0 %v2607_v59  ;;  %v2654_v59 = vld [vmem:[#allocation4 + $0x120] sm:$0xf]  ;;  %v2599_v52 = vor.u32 %v3226_v48, %v2598_v45  ;;  %v3208_v48 = vld [vmem:[#allocation4 + $0x2c] sm:$0xf]  ;;  %s558_s30 = scalar_lea.vmem %s4120_s27, %s3371_s20 }
  0x3a   : > { %806 = vmatpush.bf16.msra.mxu3 %v2475_v2  ;;  %v2736_v2 = vld [vmem:[#allocation4 + $0x1d0] sm:$0xf0] }
  0xa8   : > { %v588_v5 = vpop.f32.mrf.mxu1 }
  0xa9   : > { %v589_v6 = vadd.f32 %v3428_v3, %v588_v5  ;;  %v3191_v3 = vld [vmem:[%s4096_s5 + $0x24] sm:$0xf]  ;;  %v2463_v5 = vor.u32 %v3192_v1, %v2462_v0  ;;  %v2611_v0 = vor.u32 %v3227_v61, %v2608_v62  ;;  %v3241_v61 = vld [vmem:[#allocation4 + $0x12c] sm:$0xf0] }
  0xaa   : > { %v2467_v7 = vor.u32 %v3191_v3, %v2464_v4  ;;  %v3259_v1 = vld [vmem:[#allocation4 + $0x1c4] sm:$0xf]  ;;  %v2590_v4 = vld [vmem:[#allocation4 + $0xa0] sm:$0xf] }
  0xab   : > { %v592_v8 = vpack.c.bf16 %v589_v6, %v589_v6  ;;  %794 = vmatpush.bf16.msra.mxu2 %v2463_v5  ;;  %v2739_v3 = vor.u32 %v3259_v1, %v2736_v2  ;;  %v3225_v5 = vld [vmem:[#allocation4 + $0xac] sm:$0xf0]  ;;  %v3207_v62 = vld [vmem:[#allocation4 + $0x24] sm:$0xf] }
  0xac   : > { %807 = vmatpush.bf16.msra.mxu3 %v2467_v7  ;;  %v2591_v7 = vor.u32 %v3225_v5, %v2590_v4  ;;  %v3239_v2 = vld [vmem:[#allocation4 + $0x124] sm:$0xf]  ;;  %v2510_v4 = vld [vmem:[#allocation4] sm:$0xf] }
  0xad   : > { %v593_v9 = vxor.u32 2147516416, %v592_v8  ;;  %v610_v30 = vunpack.c.l.bf16 %v592_v8  ;;  %v2454_v8 = vld [vmem:[%s4096_s5 + $0x10] sm:$0xf] }
  0xae   : > { %1240 = vmatpush.bf16.msra.mxu0 %v2591_v7  ;;  %v2638_v7 = vld [vmem:[#allocation4 + $0x100] sm:$0xf] }
  0xaf   : > { %v594_v11 = vunpack.c.l.bf16 %v593_v9  ;;  %v3190_v9 = vld [vmem:[%s4096_s5 + $0x14] sm:$0xf0] }
  0xb0   : > { %v590_v12 = vpop.f32.mrf.mxu1  ;;  %v2455_v14 = vor.u32 %v3190_v9, %v2454_v8  ;;  %v3257_v8 = vld [vmem:[#allocation4 + $0x1ac] sm:$0xf0]  ;;  %v3223_v9 = vld [vmem:[#allocation4 + $0xa4] sm:$0xf] }
  0xb1   : > { %v595_v13 = vmul.f32 1.442695, %v594_v11  ;;  %v3189_v11 = vld [vmem:[%s4096_s5 + $0x14] sm:$0xf]  ;;  %v2456_v12 = vld [vmem:[%s4096_s5 + $0x18] sm:$0xf0] }
  0xb2   : > { %795 = vmatpush.bf16.msra.mxu2 %v2455_v14  ;;  %v2720_v14 = vld [vmem:[#allocation4 + $0x1b0] sm:$0xf0] }
  0xb3   : > { %3431 = vpow2.f32 %v595_v13 }
  0xb9   : > { %v3432_v15 = vpop.eup %3431 }
  0xba   : > { %v597_v16 = vpack.c.bf16 %v3432_v15, %v3432_v15  ;;  %v2459_v15 = vor.u32 %v3189_v11, %v2456_v12 }
  0xbc   : > { %v598_v17 = vunpack.c.l.bf16 %v597_v16  ;;  %v2446_v16 = vld [vmem:[%s4096_s5] sm:$0xf]  ;;  %808 = vmatpush.bf16.msra.mxu3 %v2459_v15 }
  0xbe   : > { %v599_v18 = vadd.f32 1.0, %v598_v17  ;;  %v3188_v17 = vld [vmem:[%s4096_s5 + $0x4] sm:$0xf0] }
  0xbf   : > { %v2447_v22 = vor.u32 %v3188_v17, %v2446_v16  ;;  %v2574_v16 = vld [vmem:[#allocation4 + $0x80] sm:$0xf]  ;;  %v3221_v17 = vld [vmem:[#allocation4 + $0x8c] sm:$0xf0] }
  0xc0   : > { %v600_v19 = vpack.c.bf16 %v599_v18, %v599_v18 }
  0xc1   : > { %796 = vmatpush.bf16.msra.mxu2 %v2447_v22  ;;  %v2576_v22 = vld [vmem:[#allocation4 + $0x90] sm:$0xf0] }
  0xc2   : > { %v603_v20 = vunpack.c.h.bf16 %v600_v19  ;;  %v604_v21 = vunpack.c.l.bf16 %v600_v19  ;;  %v3187_v19 = vld [vmem:[%s4096_s5 + $0x4] sm:$0xf] }
  0xc4   : > { %3433 = vrcp.f32 %v603_v20  ;;  %v2448_v20 = vld [vmem:[%s4096_s5 + $0x8] sm:$0xf0] }
  0xc5   : > { %3435 = vrcp.f32 %v604_v21  ;;  %1264 = vmatpush.bf16.msrb.mxu2 %v2627_v54 }
  0xc9   : > { %1265 = vmatpush.bf16.msrb.mxu2 %v2611_v0  ;;  %v2655_v0 = vor.u32 %v3241_v61, %v2654_v59 }
  0xca   : > { %v3434_v25 = vpop.eup %3433 }
  0xcb   : > { %v3436_v26 = vpop.eup %3435  ;;  %v606_v27 = vmul.f32 %v3434_v25, %v3783_v23 }
  0xcc   : > { %v608_v28 = vmul.f32 %v3436_v26, %v3785_v24  ;;  %v2451_v26 = vor.u32 %v3187_v19, %v2448_v20  ;;  %v2575_v19 = vor.u32 %v3221_v17, %v2574_v16  ;;  %v3253_v20 = vld [vmem:[#allocation4 + $0x18c] sm:$0xf0]  ;;  %v2630_v16 = vld [vmem:[#allocation4 + $0xe8] sm:$0xf]  ;;  %v3234_v17 = vld [vmem:[#allocation4 + $0xf4] sm:$0xf0] }
  0xce   : > { %v609_v29 = vpack.c.bf16 %v606_v27, %v608_v28  ;;  %809 = vmatpush.bf16.msra.mxu3 %v2451_v26  ;;  %1241 = vmatpush.bf16.msra.mxu0 %v2575_v19  ;;  %v2631_v19 = vor.u32 %v3234_v17, %v2630_v16  ;;  %v3218_v16 = vld [vmem:[#allocation4 + $0x74] sm:$0xf0]  ;;  %v2694_v17 = vld [vmem:[#allocation4 + $0x168] sm:$0xf] }
  0xd0   : > { %v611_v31 = vunpack.c.l.bf16 %v609_v29 }
  0xd2   : > { %v612_v32 = vmul.f32 %v611_v31, %v610_v30  ;;  %1277 = vmatpush.bf16.msrb.mxu3 %v2755_v55 }
  0xd4   : > { %v613_v33 = vpack.c.bf16 %v612_v32, %v612_v32 }
  0xd6   : > { %2443 = vmatmul.msk.bf16.vlgmr.msrb.gmra.mxu1 %vm650_vm1, %v613_v33  ;;  %1278 = vmatpush.bf16.msrb.mxu3 %v2739_v3  ;;  %v2656_v3 = vld [vmem:[#allocation4 + $0x130] sm:$0xf0] }
  0xd7   : > { %v2659_v5 = vor.u32 %v3239_v2, %v2656_v3  ;;  %v2584_v2 = vld [vmem:[#allocation4 + $0x98] sm:$0xf0] }
 0x153   : > { %v663_v6 = vpop.f32.mrf.mxu1 }
 0x154   : > { %v664_v10 = vadd.f32 %v3429_v58, %v663_v6  ;;  %v2734_v58 = vld [vmem:[#allocation4 + $0x1c0] sm:$0xf] }
 0x155   : > { %v2735_v63 = vor.u32 %v3261_v60, %v2734_v58  ;;  %v2718_v6 = vld [vmem:[#allocation4 + $0x1a0] sm:$0xf]  ;;  %v3209_v58 = vld [vmem:[#allocation4 + $0x2c] sm:$0xf0] }
 0x156   : > { %v667_v13 = vpack.c.bf16 %v664_v10, %v664_v10  ;;  %v2592_v10 = vld [vmem:[#allocation4 + $0xb0] sm:$0xf0]  ;;  %v2719_v11 = vor.u32 %v3257_v8, %v2718_v6  ;;  %v2527_v60 = vor.u32 %v3209_v58, %v2526_v57  ;;  %v3205_v6 = vld [vmem:[#allocation4 + $0xc] sm:$0xf0]  ;;  %v2582_v57 = vld [vmem:[#allocation4 + $0x88] sm:$0xf] }
 0x157   : > { %1252 = vmatpush.bf16.msra.mxu1 %v2735_v63  ;;  %v2595_v12 = vor.u32 %v3223_v9, %v2592_v10  ;;  %v2528_v63 = vld [vmem:[#allocation4 + $0x30] sm:$0xf0]  ;;  %v3237_v8 = vld [vmem:[#allocation4 + $0x10c] sm:$0xf0]  ;;  %v2511_v9 = vor.u32 %v3205_v6, %v2510_v4  ;;  %v3222_v58 = vld [vmem:[#allocation4 + $0x94] sm:$0xf0] }
 0x158   : > { %v668_v18 = vxor.u32 2147516416, %v667_v13  ;;  %v683_v40 = vunpack.c.l.bf16 %v667_v13  ;;  %v3255_v13 = vld [vmem:[#allocation4 + $0x1a4] sm:$0xf]  ;;  %v2531_v1 = vor.u32 %v3207_v62, %v2528_v63  ;;  %v2639_v10 = vor.u32 %v3237_v8, %v2638_v7  ;;  %v2710_v62 = vld [vmem:[#allocation4 + $0x188] sm:$0xf] }
 0x159   : > { %v2723_v15 = vor.u32 %v3255_v13, %v2720_v14  ;;  %1266 = vmatpush.bf16.msrb.mxu2 %v2595_v12  ;;  %v2512_v12 = vld [vmem:[#allocation4 + $0x10] sm:$0xf0]  ;;  %v3235_v13 = vld [vmem:[#allocation4 + $0x104] sm:$0xf]  ;;  %v3252_v6 = vld [vmem:[#allocation4 + $0x18c] sm:$0xf] }
 0x15a   : > { %v669_v21 = vunpack.c.l.bf16 %v668_v18  ;;  %v2702_v18 = vld [vmem:[#allocation4 + $0x180] sm:$0xf]  ;;  %v2712_v7 = vld [vmem:[#allocation4 + $0x198] sm:$0xf0] }
 0x15b   : > { %v665_v25 = vpop.f32.mrf.mxu1  ;;  %1253 = vmatpush.bf16.msra.mxu1 %v2719_v11  ;;  %1279 = vmatpush.bf16.msrb.mxu3 %v2723_v15  ;;  %v3203_v11 = vld [vmem:[#allocation4 + $0x4] sm:$0xf]  ;;  %v2640_v15 = vld [vmem:[#allocation4 + $0x110] sm:$0xf0] }
 0x15c   : > { %v670_v27 = vmul.f32 1.442695, %v669_v21  ;;  %v3219_v21 = vld [vmem:[#allocation4 + $0x84] sm:$0xf]  ;;  %v2703_v25 = vor.u32 %v3253_v20, %v2702_v18  ;;  %v2515_v14 = vor.u32 %v3203_v11, %v2512_v12  ;;  %v2643_v18 = vor.u32 %v3235_v13, %v2640_v15  ;;  %v2758_v20 = vld [vmem:[#allocation4 + $0x1e8] sm:$0xf] }
 0x15d   : > { %v2579_v26 = vor.u32 %v3219_v21, %v2576_v22  ;;  %v3266_v21 = vld [vmem:[#allocation4 + $0x1f4] sm:$0xf0]  ;;  %v3232_v22 = vld [vmem:[#allocation4 + $0xec] sm:$0xf]  ;;  %v2566_v15 = vld [vmem:[#allocation4 + $0x68] sm:$0xf] }
 0x15e   : > { %3437 = vpow2.f32 %v670_v27  ;;  %v3251_v27 = vld [vmem:[#allocation4 + $0x184] sm:$0xf] }
 0x15f   : > { %1254 = vmatpush.bf16.msra.mxu1 %v2703_v25  ;;  %1267 = vmatpush.bf16.msrb.mxu2 %v2579_v26  ;;  %v2759_v25 = vor.u32 %v3266_v21, %v2758_v20  ;;  %v2632_v26 = vld [vmem:[#allocation4 + $0xf8] sm:$0xf0]  ;;  %v3216_v20 = vld [vmem:[#allocation4 + $0x6c] sm:$0xf] }
 0x160   : > { %v2568_v21 = vld [vmem:[#allocation4 + $0x78] sm:$0xf0] }
 0x164   : > { %v3438_v28 = vpop.eup %3437 }
 0x165   : > { %v672_v29 = vpack.c.bf16 %v3438_v28, %v3438_v28  ;;  %v2704_v28 = vld [vmem:[#allocation4 + $0x190] sm:$0xf0] }
 0x167   : > { %v673_v30 = vunpack.c.l.bf16 %v672_v29  ;;  %v2707_v29 = vor.u32 %v3251_v27, %v2704_v28  ;;  %v3264_v27 = vld [vmem:[#allocation4 + $0x1ec] sm:$0xf]  ;;  %v2760_v28 = vld [vmem:[#allocation4 + $0x1f8] sm:$0xf0] }
 0x169   : > { %v674_v31 = vadd.f32 1.0, %v673_v30  ;;  %v2558_v30 = vld [vmem:[#allocation4 + $0x60] sm:$0xf]  ;;  %1280 = vmatpush.bf16.msrb.mxu3 %v2707_v29  ;;  %v2635_v29 = vor.u32 %v3232_v22, %v2632_v26  ;;  %v3248_v26 = vld [vmem:[#allocation4 + $0x16c] sm:$0xf] }
 0x16b   : > { %v675_v32 = vpack.c.bf16 %v674_v31, %v674_v31  ;;  %v3217_v31 = vld [vmem:[#allocation4 + $0x6c] sm:$0xf0] }
 0x16d   : > { %v676_v33 = vunpack.c.h.bf16 %v675_v32  ;;  %v677_v34 = vunpack.c.l.bf16 %v675_v32  ;;  %v2686_v32 = vld [vmem:[#allocation4 + $0x160] sm:$0xf] }
 0x16f   : > { %3439 = vrcp.f32 %v676_v33  ;;  %v2559_v33 = vor.u32 %v3217_v31, %v2558_v30  ;;  %v2763_v30 = vor.u32 %v3264_v27, %v2760_v28  ;;  %v2614_v31 = vld [vmem:[#allocation4 + $0xc8] sm:$0xf]  ;;  %v2696_v27 = vld [vmem:[#allocation4 + $0x178] sm:$0xf0] }
 0x170   : > { %3441 = vrcp.f32 %v677_v34  ;;  %v3249_v34 = vld [vmem:[#allocation4 + $0x16c] sm:$0xf0]  ;;  %v2550_v28 = vld [vmem:[#allocation4 + $0x48] sm:$0xf] }
 0x171   : > { %1242 = vmatpush.bf16.msra.mxu0 %v2559_v33  ;;  %v2742_v33 = vld [vmem:[#allocation4 + $0x1c8] sm:$0xf] }
 0x175   : > { %v3440_v35 = vpop.eup %3439 }
 0x176   : > { %v3442_v36 = vpop.eup %3441  ;;  %v679_v37 = vmul.f32 %v3440_v35, %v3783_v23  ;;  %v3215_v35 = vld [vmem:[#allocation4 + $0x64] sm:$0xf] }
 0x177   : > { %v681_v38 = vmul.f32 %v3442_v36, %v3785_v24  ;;  %v2560_v36 = vld [vmem:[#allocation4 + $0x70] sm:$0xf0] }
 0x179   : > { %v682_v39 = vpack.c.bf16 %v679_v37, %v681_v38  ;;  %v2687_v37 = vor.u32 %v3249_v34, %v2686_v32  ;;  %v2563_v38 = vor.u32 %v3215_v35, %v2560_v36  ;;  %v3230_v32 = vld [vmem:[#allocation4 + $0xd4] sm:$0xf0] }
 0x17a   : > { %v2615_v36 = vor.u32 %v3230_v32, %v2614_v31  ;;  %v3214_v31 = vld [vmem:[#allocation4 + $0x54] sm:$0xf0]  ;;  %v2678_v32 = vld [vmem:[#allocation4 + $0x148] sm:$0xf] }
 0x17b   : > { %v684_v41 = vunpack.c.l.bf16 %v682_v39  ;;  %v3247_v39 = vld [vmem:[#allocation4 + $0x164] sm:$0xf]  ;;  %1255 = vmatpush.bf16.msra.mxu1 %v2687_v37  ;;  %1268 = vmatpush.bf16.msrb.mxu2 %v2563_v38  ;;  %v3262_v37 = vld [vmem:[#allocation4 + $0x1d4] sm:$0xf0]  ;;  %v3228_v38 = vld [vmem:[#allocation4 + $0xcc] sm:$0xf] }
 0x17d   : > { %v685_v42 = vmul.f32 %v684_v41, %v683_v40  ;;  %v2688_v40 = vld [vmem:[#allocation4 + $0x170] sm:$0xf0]  ;;  %v3893_v41 = vld [vmem:[%s4097_s6] sm:$0x3] }
 0x17e   : > { %v705_v54 = vperm.slane %v3893_v41, 0  ;;  %v706_v55 = vperm.slane %v3893_v41, 1 }
 0x17f   : > { %v686_v43 = vpack.c.bf16 %v685_v42, %v685_v42  ;;  %v2691_v42 = vor.u32 %v3247_v39, %v2688_v40  ;;  %1256 = vmatpush.bf16.msra.mxu1 %v2671_v50  ;;  %1269 = vmatpush.bf16.msrb.mxu2 %v2547_v51  ;;  %v2616_v39 = vld [vmem:[#allocation4 + $0xd8] sm:$0xf0]  ;;  %v3258_v50 = vld [vmem:[#allocation4 + $0x1b4] sm:$0xf0] }
 0x181   : > { %797 = vmatmul.bf16.vlgmr.msra.gmra.mxu2 %v686_v43  ;;  %810 = vmatmul.bf16.vlgmr.msra.gmra.mxu3 %v686_v43  ;;  %v2542_v43 = vld [vmem:[#allocation4 + $0x40] sm:$0xf] }
 0x182   : > { %1281 = vmatpush.bf16.msrb.mxu3 %v2691_v42  ;;  %v2543_v46 = vor.u32 %v3213_v44, %v2542_v43  ;;  %v2743_v42 = vor.u32 %v3262_v37, %v2742_v33  ;;  %v3260_v43 = vld [vmem:[#allocation4 + $0x1cc] sm:$0xf]  ;;  %v2744_v44 = vld [vmem:[#allocation4 + $0x1d8] sm:$0xf0]  ;;  %v3246_v33 = vld [vmem:[#allocation4 + $0x154] sm:$0xf0] }
 0x183   : > { %1257 = vmatpush.bf16.msra.mxu1 %v2655_v0  ;;  %1270 = vmatpush.bf16.msrb.mxu2 %v2531_v1  ;;  %v2747_v47 = vor.u32 %v3260_v43, %v2744_v44  ;;  %v3254_v0 = vld [vmem:[#allocation4 + $0x194] sm:$0xf0]  ;;  %v3220_v1 = vld [vmem:[#allocation4 + $0x8c] sm:$0xf]  ;;  %v2534_v43 = vld [vmem:[#allocation4 + $0x28] sm:$0xf] }
 0x184   : > { %1243 = vmatpush.bf16.msra.mxu0 %v2543_v46  ;;  %v2619_v46 = vor.u32 %v3228_v38, %v2616_v39  ;;  %v2711_v12 = vor.u32 %v3254_v0, %v2710_v62  ;;  %v2587_v13 = vor.u32 %v3220_v1, %v2584_v2  ;;  %v3212_v37 = vld [vmem:[#allocation4 + $0x4c] sm:$0xf]  ;;  %v2552_v38 = vld [vmem:[#allocation4 + $0x58] sm:$0xf0]  ;;  %v3210_v44 = vld [vmem:[#allocation4 + $0x34] sm:$0xf0] }
 0x185   : > { %v3244_v39 = vld [vmem:[#allocation4 + $0x14c] sm:$0xf]  ;;  %v3238_v0 = vld [vmem:[#allocation4 + $0x114] sm:$0xf0]  ;;  %v2520_v2 = vld [vmem:[#allocation4 + $0x18] sm:$0xf0] }
 0x186   : > { %1282 = vmatpush.bf16.msrb.mxu3 %v2675_v56  ;;  %v2600_v56 = vld [vmem:[#allocation4 + $0xb8] sm:$0xf0]  ;;  %v3204_v1 = vld [vmem:[#allocation4 + $0xc] sm:$0xf] }
 0x187   : > { %1258 = vmatpush.bf16.msra.mxu1 %v2639_v10  ;;  %1271 = vmatpush.bf16.msrb.mxu2 %v2515_v14  ;;  %v2603_v61 = vor.u32 %v3224_v53, %v2600_v56  ;;  %v2715_v14 = vor.u32 %v3252_v6, %v2712_v7  ;;  %v2536_v53 = vld [vmem:[#allocation4 + $0x38] sm:$0xf0]  ;;  %v3240_v56 = vld [vmem:[#allocation4 + $0x12c] sm:$0xf] }
 0x188   : > { %1244 = vmatpush.bf16.msra.mxu0 %v2527_v60  ;;  %v2727_v60 = vor.u32 %v3258_v50, %v2726_v49 }
 0x18a   : > { %1283 = vmatpush.bf16.msrb.mxu3 %v2659_v5  ;;  %v2583_v5 = vor.u32 %v3222_v58, %v2582_v57  ;;  %v2539_v57 = vor.u32 %v3208_v48, %v2536_v53  ;;  %v2518_v58 = vld [vmem:[#allocation4 + $0x8] sm:$0xf]  ;;  %v2854_v53 = vld [vmem:[#allocation6 + $0xb0] sm:$0xf] }
 0x18b   : > { %1303 = vmatpush.bf16.msrb.mxu1 %v2759_v25  ;;  %1316 = vmatpush.bf16.msra.mxu2 %v2635_v29  ;;  %v2571_v25 = vor.u32 %v3216_v20, %v2568_v21  ;;  %v3292_v48 = vld [vmem:[#allocation6 + $0xc4] sm:$0xf0] }
 0x18c   : > { %1245 = vmatpush.bf16.msra.mxu0 %v2511_v9 }
 0x18e   : > { %1284 = vmatpush.bf16.msrb.mxu3 %v2643_v18  ;;  %v2567_v18 = vor.u32 %v3218_v16, %v2566_v15 }
 0x18f   : > { %1304 = vmatpush.bf16.msrb.mxu1 %v2743_v42  ;;  %1317 = vmatpush.bf16.msra.mxu2 %v2619_v46  ;;  %v2680_v42 = vld [vmem:[#allocation4 + $0x158] sm:$0xf0]  ;;  %v2662_v46 = vld [vmem:[#allocation4 + $0x128] sm:$0xf] }
 0x190   : > { %1290 = vmatpush.bf16.msrb.mxu0 %v2631_v19  ;;  %v3250_v19 = vld [vmem:[#allocation4 + $0x174] sm:$0xf0]  ;;  %v2683_v45 = vor.u32 %v3244_v39, %v2680_v42 }
 0x191   : > { %v2695_v22 = vor.u32 %v3250_v19, %v2694_v17  ;;  %v3278_v39 = vld [vmem:[#allocation6 + $0x54] sm:$0xf0] }
 0x192   : > { %1329 = vmatpush.bf16.msra.mxu3 %v2763_v30  ;;  %v2699_v30 = vor.u32 %v3248_v26, %v2696_v27  ;;  %v2822_v27 = vld [vmem:[#allocation6 + $0x70] sm:$0xf]  ;;  %v3294_v42 = vld [vmem:[#allocation6 + $0xd4] sm:$0xf0] }
 0x193   : > { %1305 = vmatpush.bf16.msrb.mxu1 %v2727_v60  ;;  %1318 = vmatpush.bf16.msra.mxu2 %v2603_v61  ;;  %v2646_v60 = vld [vmem:[#allocation4 + $0x108] sm:$0xf] }
 0x194   : > { %1291 = vmatpush.bf16.msrb.mxu0 %v2615_v36  ;;  %v2679_v36 = vor.u32 %v3246_v33, %v2678_v32  ;;  %v2647_v7 = vor.u32 %v3238_v0, %v2646_v60  ;;  %v2814_v32 = vld [vmem:[#allocation6 + $0x60] sm:$0xf]  ;;  %v3280_v33 = vld [vmem:[#allocation6 + $0x64] sm:$0xf0]  ;;  %v3014_v60 = vld [vmem:[#allocation6 + $0x1f0] sm:$0xf] }
 0x195   : > { %v2782_v0 = vld [vmem:[#allocation6 + $0x20] sm:$0xf] }
 0x196   : > { %1330 = vmatpush.bf16.msra.mxu3 %v2747_v47  ;;  %v3242_v47 = vld [vmem:[#allocation4 + $0x134] sm:$0xf0] }
 0x197   : > { %1306 = vmatpush.bf16.msrb.mxu1 %v2711_v12  ;;  %1319 = vmatpush.bf16.msra.mxu2 %v2587_v13 }
 0x198   : > { %1292 = vmatpush.bf16.msrb.mxu0 %v2599_v52  ;;  %v2535_v52 = vor.u32 %v3210_v44, %v2534_v43  ;;  %v2798_v44 = vld [vmem:[#allocation6 + $0x40] sm:$0xf] }
 0x19b   : > { %1307 = vmatpush.bf16.msrb.mxu1 %v2695_v22  ;;  %1320 = vmatpush.bf16.msra.mxu2 %v2571_v25 }
 0x19c   : > { %1293 = vmatpush.bf16.msrb.mxu0 %v2583_v5 }
 0x19f   : > { %1308 = vmatpush.bf16.msrb.mxu1 %v2679_v36  ;;  %v3296_v36 = vld [vmem:[#allocation6 + $0xe4] sm:$0xf0] }
 0x1a0   : > { %1294 = vmatpush.bf16.msrb.mxu0 %v2567_v18 }
 0x204   : > { %v798_v34 = vpop.f32.mrf.mxu2  ;;  %v811_v35 = vpop.f32.mrf.mxu3 }
 0x205   : > { %v799_v40 = vadd.f32 %v798_v34, %v705_v54  ;;  %v812_v41 = vadd.f32 %v811_v35, %v706_v55  ;;  %v3256_v54 = vld [vmem:[#allocation4 + $0x1ac] sm:$0xf]  ;;  %v2728_v55 = vld [vmem:[#allocation4 + $0x1b8] sm:$0xf0]  ;;  %v2551_v35 = vor.u32 %v3214_v31, %v2550_v28  ;;  %v3282_v28 = vld [vmem:[#allocation6 + $0x74] sm:$0xf0] }
 0x206   : > { %v2731_v63 = vor.u32 %v3256_v54, %v2728_v55  ;;  %v2664_v54 = vld [vmem:[#allocation4 + $0x138] sm:$0xf0]  ;;  %v2663_v55 = vor.u32 %v3242_v47, %v2662_v46  ;;  %v3298_v31 = vld [vmem:[#allocation6 + $0xf4] sm:$0xf0]  ;;  %v2862_v46 = vld [vmem:[#allocation6 + $0xc0] sm:$0xf] }
 0x207   : > { %v3897_v51 = vpack.c.bf16 %v812_v41, %v799_v40  ;;  %v2555_v41 = vor.u32 %v3212_v37, %v2552_v38  ;;  %1295 = vmatpush.bf16.msrb.mxu0 %v2551_v35  ;;  %v2815_v35 = vor.u32 %v3280_v33, %v2814_v32  ;;  %v2806_v38 = vld [vmem:[#allocation6 + $0x50] sm:$0xf] }
 0x208   : > { %1331 = vmatpush.bf16.msra.mxu3 %v2731_v63  ;;  %v2667_v63 = vor.u32 %v3240_v56, %v2664_v54  ;;  %1309 = vmatpush.bf16.msrb.mxu1 %v2663_v55  ;;  %v3290_v54 = vld [vmem:[#allocation6 + $0xb4] sm:$0xf0]  ;;  %v2950_v55 = vld [vmem:[#allocation6 + $0x170] sm:$0xf] }
 0x209   : > { %v816_v59 = vxor.u32 2147516416, %v3897_v51  ;;  %1321 = vmatpush.bf16.msra.mxu2 %v2555_v41  ;;  %v836_v17 = vunpack.c.l.bf16 %v3897_v51  ;;  %v837_v18 = vunpack.c.h.bf16 %v3897_v51  ;;  %v2807_v41 = vor.u32 %v3278_v39, %v2806_v38  ;;  %v2990_v39 = vld [vmem:[#allocation6 + $0x1c0] sm:$0xf] }
 0x20b   : > { %v817_v3 = vunpack.c.l.bf16 %v816_v59  ;;  %v818_v4 = vunpack.c.h.bf16 %v816_v59  ;;  %v3206_v59 = vld [vmem:[#allocation4 + $0x14] sm:$0xf0]  ;;  %1296 = vmatpush.bf16.msrb.mxu0 %v2535_v52 }
 0x20c   : > { %v800_v8 = vpop.f32.mrf.mxu2  ;;  %v813_v9 = vpop.f32.mrf.mxu3  ;;  %1332 = vmatpush.bf16.msra.mxu3 %v2715_v14  ;;  %v2519_v6 = vor.u32 %v3206_v59, %v2518_v58  ;;  %1310 = vmatpush.bf16.msrb.mxu1 %v2647_v7  ;;  %v3274_v52 = vld [vmem:[#allocation6 + $0x34] sm:$0xf0]  ;;  %v2855_v58 = vor.u32 %v3290_v54, %v2854_v53 }
 0x20d   : > { %v819_v10 = vmul.f32 1.442695, %v817_v3  ;;  %v821_v11 = vmul.f32 1.442695, %v818_v4  ;;  %v3236_v3 = vld [vmem:[#allocation4 + $0x10c] sm:$0xf]  ;;  %1322 = vmatpush.bf16.msra.mxu2 %v2539_v57  ;;  %v2523_v8 = vor.u32 %v3204_v1, %v2520_v2 }
 0x20e   : > { %v2648_v4 = vld [vmem:[#allocation4 + $0x118] sm:$0xf0]  ;;  %v3314_v57 = vld [vmem:[#allocation6 + $0x174] sm:$0xf0]  ;;  %v3272_v1 = vld [vmem:[#allocation6 + $0x24] sm:$0xf0] }
 0x20f   : > { %3443 = vpow2.f32 %v819_v10  ;;  %1297 = vmatpush.bf16.msrb.mxu0 %v2519_v6  ;;  %v2951_v59 = vor.u32 %v3314_v57, %v2950_v55  ;;  %v2846_v2 = vld [vmem:[#allocation6 + $0xa0] sm:$0xf]  ;;  %v3312_v6 = vld [vmem:[#allocation6 + $0x164] sm:$0xf0]  ;;  %v3306_v54 = vld [vmem:[#allocation6 + $0x134] sm:$0xf0] }
 0x210   : > { %3445 = vpow2.f32 %v821_v11  ;;  %1333 = vmatpush.bf16.msra.mxu3 %v2699_v30  ;;  %v2651_v11 = vor.u32 %v3236_v3, %v2648_v4  ;;  %v2823_v30 = vor.u32 %v3282_v28, %v2822_v27  ;;  %v2783_v3 = vor.u32 %v3272_v1, %v2782_v0  ;;  %v3288_v4 = vld [vmem:[#allocation6 + $0xa4] sm:$0xf0]  ;;  %v3326_v27 = vld [vmem:[#allocation6 + $0x1d4] sm:$0xf0]  ;;  %v2982_v55 = vld [vmem:[#allocation6 + $0x1b0] sm:$0xf] }
 0x211   : > { %1323 = vmatpush.bf16.msra.mxu2 %v2523_v8  ;;  %v2847_v7 = vor.u32 %v3288_v4, %v2846_v2  ;;  %v3295_v2 = vld [vmem:[#allocation6 + $0xe4] sm:$0xf] }
 0x214   : > { %1334 = vmatpush.bf16.msra.mxu3 %v2683_v45  ;;  %v3276_v45 = vld [vmem:[#allocation6 + $0x44] sm:$0xf0] }
 0x215   : > { %v3444_v29 = vpop.eup %3443  ;;  %v2799_v47 = vor.u32 %v3276_v45, %v2798_v44  ;;  %v2824_v45 = vld [vmem:[#allocation6 + $0x78] sm:$0xf0] }
 0x216   : > { %v3446_v34 = vpop.eup %3445 }
 0x217   : > { %v823_v40 = vpack.c.bf16 %v3446_v34, %v3444_v29  ;;  %v2886_v29 = vld [vmem:[#allocation6 + $0xf0] sm:$0xf]  ;;  %v2878_v34 = vld [vmem:[#allocation6 + $0xe0] sm:$0xf] }
 0x218   : > { %1335 = vmatpush.bf16.msra.mxu3 %v2667_v63  ;;  %v2887_v51 = vor.u32 %v3298_v31, %v2886_v29  ;;  %v2879_v37 = vor.u32 %v3296_v36, %v2878_v34  ;;  %v3268_v31 = vld [vmem:[#allocation6 + $0x4] sm:$0xf0] }
 0x219   : > { %v824_v49 = vunpack.c.l.bf16 %v823_v40  ;;  %v825_v50 = vunpack.c.h.bf16 %v823_v40  ;;  %v2870_v40 = vld [vmem:[#allocation6 + $0xd0] sm:$0xf]  ;;  %v3284_v34 = vld [vmem:[#allocation6 + $0x84] sm:$0xf0] }
 0x21a   : > { %v2871_v43 = vor.u32 %v3294_v42, %v2870_v40  ;;  %v3308_v36 = vld [vmem:[#allocation6 + $0x144] sm:$0xf0] }
 0x21b   : > { %v826_v61 = vadd.f32 1.0, %v824_v49  ;;  %v827_v62 = vadd.f32 1.0, %v825_v50  ;;  %v2863_v49 = vor.u32 %v3292_v48, %v2862_v46  ;;  %v2790_v50 = vld [vmem:[#allocation6 + $0x30] sm:$0xf]  ;;  %v3324_v40 = vld [vmem:[#allocation6 + $0x1c4] sm:$0xf0] }
 0x21c   : > { %1336 = vmatpush.bf16.msra.mxu3 %v2651_v11  ;;  %v2791_v56 = vor.u32 %v3274_v52, %v2790_v50  ;;  %v2991_v44 = vor.u32 %v3324_v40, %v2990_v39  ;;  %v3297_v46 = vld [vmem:[#allocation6 + $0xf4] sm:$0xf]  ;;  %v2864_v39 = vld [vmem:[#allocation6 + $0xc8] sm:$0xf0] }
 0x21d   : > { %v828_v5 = vpack.c.bf16 %v827_v62, %v826_v61  ;;  %v3330_v61 = vld [vmem:[#allocation6 + $0x1f4] sm:$0xf0]  ;;  %v3907_v62 = vld [vmem:[%s4099_s8] sm:$0xf] }
 0x21e   : > { %v3015_v63 = vor.u32 %v3330_v61, %v3014_v60  ;;  %v910_v11 = vperm.slane %v3907_v62, 0  ;;  %v911_v28 = vperm.slane %v3907_v62, 1  ;;  %v3279_v60 = vld [vmem:[#allocation6 + $0x64] sm:$0xf]  ;;  %v2816_v61 = vld [vmem:[#allocation6 + $0x68] sm:$0xf0] }
 0x21f   : > { %v829_v9 = vunpack.c.h.bf16 %v828_v5  ;;  %v830_v10 = vunpack.c.l.bf16 %v828_v5  ;;  %v2942_v5 = vld [vmem:[#allocation6 + $0x160] sm:$0xf]  ;;  %v2819_v1 = vor.u32 %v3279_v60, %v2816_v61  ;;  %v913_v40 = vperm.slane %v3907_v62, 3  ;;  %v2952_v61 = vld [vmem:[#allocation6 + $0x178] sm:$0xf0] }
 0x220   : > { %v2943_v8 = vor.u32 %v3312_v6, %v2942_v5  ;;  %v2910_v6 = vld [vmem:[#allocation6 + $0x120] sm:$0xf] }
 0x221   : > { %3447 = vrcp.f32 %v829_v9  ;;  %v3006_v9 = vld [vmem:[#allocation6 + $0x1e0] sm:$0xf] }
 0x222   : > { %3449 = vrcp.f32 %v830_v10  ;;  %v3328_v10 = vld [vmem:[#allocation6 + $0x1e4] sm:$0xf0] }
 0x227   : > { %v3448_v12 = vpop.eup %3447 }
 0x228   : > { %v3450_v13 = vpop.eup %3449  ;;  %v832_v14 = vmul.f32 %v3448_v12, %v3783_v23  ;;  %v3007_v12 = vor.u32 %v3328_v10, %v3006_v9  ;;  %v3320_v10 = vld [vmem:[#allocation6 + $0x1a4] sm:$0xf0] }
 0x229   : > { %v834_v15 = vmul.f32 %v3450_v13, %v3785_v24 }
 0x22b   : > { %v835_v16 = vpack.c.bf16 %v832_v14, %v834_v15  ;;  %v2774_v15 = vld [vmem:[#allocation6 + $0x10] sm:$0xf] }
 0x22d   : > { %v838_v19 = vunpack.c.l.bf16 %v835_v16  ;;  %v839_v20 = vunpack.c.h.bf16 %v835_v16  ;;  %v3270_v16 = vld [vmem:[#allocation6 + $0x14] sm:$0xf0] }
 0x22f   : > { %v840_v21 = vmul.f32 %v838_v19, %v836_v17  ;;  %v841_v22 = vmul.f32 %v839_v20, %v837_v18  ;;  %v2838_v17 = vld [vmem:[#allocation6 + $0x90] sm:$0xf]  ;;  %v2775_v18 = vor.u32 %v3270_v16, %v2774_v15  ;;  %v3286_v19 = vld [vmem:[#allocation6 + $0x94] sm:$0xf0]  ;;  %v3293_v15 = vld [vmem:[#allocation6 + $0xd4] sm:$0xf] }
 0x230   : > { %v2934_v20 = vld [vmem:[#allocation6 + $0x150] sm:$0xf]  ;;  %v2872_v16 = vld [vmem:[#allocation6 + $0xd8] sm:$0xf0] }
 0x231   : > { %v842_v25 = vpack.c.bf16 %v840_v21, %v840_v21  ;;  %v843_v26 = vpack.c.bf16 %v841_v22, %v841_v22  ;;  %v3310_v21 = vld [vmem:[#allocation6 + $0x154] sm:$0xf0]  ;;  %v2839_v22 = vor.u32 %v3286_v19, %v2838_v17  ;;  %v912_v19 = vperm.slane %v3907_v62, 2  ;;  %v2856_v62 = vld [vmem:[#allocation6 + $0xb8] sm:$0xf0] }
 0x233   : > { %1246 = vmatmul.bf16.vlgmr.msra.gmra.mxu0 %v842_v25  ;;  %1259 = vmatmul.bf16.vlgmr.msra.gmra.mxu1 %v843_v26 }
 0x234   : > { %1272 = vmatmul.bf16.vlgmr.msrb.gmra.mxu2 %v842_v25  ;;  %1285 = vmatmul.bf16.vlgmr.msrb.gmra.mxu3 %v843_v26 }
 0x235   : > { %1790 = vmatpush.bf16.msra.mxu0 %v2823_v30  ;;  %1803 = vmatpush.bf16.msra.mxu1 %v2887_v51  ;;  %v2766_v30 = vld [vmem:[#allocation6] sm:$0xf] }
 0x236   : > { %1816 = vmatpush.bf16.msrb.mxu2 %v2951_v59  ;;  %1829 = vmatpush.bf16.msrb.mxu3 %v3015_v63  ;;  %v2830_v51 = vld [vmem:[#allocation6 + $0x80] sm:$0xf]  ;;  %v2767_v33 = vor.u32 %v3268_v31, %v2766_v30  ;;  %v3322_v59 = vld [vmem:[#allocation6 + $0x1b4] sm:$0xf0]  ;;  %v2966_v30 = vld [vmem:[#allocation6 + $0x190] sm:$0xf] }
 0x237   : > { %v2983_v0 = vor.u32 %v3322_v59, %v2982_v55  ;;  %v3313_v55 = vld [vmem:[#allocation6 + $0x174] sm:$0xf] }
 0x239   : > { %1791 = vmatpush.bf16.msra.mxu0 %v2815_v35  ;;  %1804 = vmatpush.bf16.msra.mxu1 %v2879_v37  ;;  %v2926_v35 = vld [vmem:[#allocation6 + $0x140] sm:$0xf]  ;;  %v2831_v37 = vor.u32 %v3284_v34, %v2830_v51  ;;  %v3318_v51 = vld [vmem:[#allocation6 + $0x194] sm:$0xf0] }
 0x23a   : > { %1817 = vmatpush.bf16.msrb.mxu2 %v2943_v8  ;;  %1830 = vmatpush.bf16.msrb.mxu3 %v3007_v12  ;;  %v2927_v38 = vor.u32 %v3308_v36, %v2926_v35  ;;  %v2974_v8 = vld [vmem:[#allocation6 + $0x1a0] sm:$0xf]  ;;  %v2808_v12 = vld [vmem:[#allocation6 + $0x58] sm:$0xf0]  ;;  %v2967_v36 = vor.u32 %v3318_v51, %v2966_v30 }
 0x23b   : > { %v2936_v30 = vld [vmem:[#allocation6 + $0x158] sm:$0xf0] }
 0x23d   : > { %1792 = vmatpush.bf16.msra.mxu0 %v2807_v41  ;;  %1805 = vmatpush.bf16.msra.mxu1 %v2871_v43  ;;  %v3281_v41 = vld [vmem:[#allocation6 + $0x74] sm:$0xf] }
 0x23e   : > { %v2827_v52 = vor.u32 %v3281_v41, %v2824_v45 }
 0x241   : > { %1793 = vmatpush.bf16.msra.mxu0 %v2799_v47  ;;  %1806 = vmatpush.bf16.msra.mxu1 %v2863_v49  ;;  %v2888_v47 = vld [vmem:[#allocation6 + $0xf8] sm:$0xf0] }
 0x242   : > { %v2891_v53 = vor.u32 %v3297_v46, %v2888_v47  ;;  %v3316_v47 = vld [vmem:[#allocation6 + $0x184] sm:$0xf0] }
 0x243   : > { %1298 = vmatmul.bf16.vlgmr.msrb.gmra.mxu0 %v842_v25  ;;  %1311 = vmatmul.bf16.vlgmr.msrb.gmra.mxu1 %v843_v26 }
 0x244   : > { %1324 = vmatmul.bf16.vlgmr.msra.gmra.mxu2 %v842_v25  ;;  %1337 = vmatmul.bf16.vlgmr.msra.gmra.mxu3 %v843_v26  ;;  %v2935_v25 = vor.u32 %v3310_v21, %v2934_v20  ;;  %v2998_v26 = vld [vmem:[#allocation6 + $0x1d0] sm:$0xf]  ;;  %v2875_v21 = vor.u32 %v3293_v15, %v2872_v16 }
 0x245   : > { %1794 = vmatpush.bf16.msra.mxu0 %v2791_v56  ;;  %1807 = vmatpush.bf16.msra.mxu1 %v2855_v58  ;;  %v2999_v29 = vor.u32 %v3326_v27, %v2998_v26  ;;  %v2918_v56 = vld [vmem:[#allocation6 + $0x130] sm:$0xf] }
 0x246   : > { %1818 = vmatpush.bf16.msrb.mxu2 %v2935_v25  ;;  %v2919_v58 = vor.u32 %v3306_v54, %v2918_v56  ;;  %v3289_v54 = vld [vmem:[#allocation6 + $0xb4] sm:$0xf] }
 0x247   : > { %1831 = vmatpush.bf16.msrb.mxu3 %v2999_v29  ;;  %v3302_v29 = vld [vmem:[#allocation6 + $0x114] sm:$0xf0]  ;;  %v2859_v60 = vor.u32 %v3289_v54, %v2856_v62 }
 0x249   : > { %1795 = vmatpush.bf16.msra.mxu0 %v2783_v3  ;;  %1808 = vmatpush.bf16.msra.mxu1 %v2847_v7  ;;  %v2880_v3 = vld [vmem:[#allocation6 + $0xe8] sm:$0xf0]  ;;  %v3304_v7 = vld [vmem:[#allocation6 + $0x124] sm:$0xf0] }
 0x24a   : > { %1819 = vmatpush.bf16.msrb.mxu2 %v2927_v38  ;;  %v2883_v4 = vor.u32 %v3295_v2, %v2880_v3  ;;  %v2911_v9 = vor.u32 %v3304_v7, %v2910_v6  ;;  %v3291_v38 = vld [vmem:[#allocation6 + $0xc4] sm:$0xf] }
 0x24b   : > { %1832 = vmatpush.bf16.msrb.mxu3 %v2991_v44  ;;  %v2867_v41 = vor.u32 %v3291_v38, %v2864_v39  ;;  %v2958_v44 = vld [vmem:[#allocation6 + $0x180] sm:$0xf]  ;;  %v3271_v3 = vld [vmem:[#allocation6 + $0x24] sm:$0xf] }
 0x24c   : > { %v3287_v6 = vld [vmem:[#allocation6 + $0xa4] sm:$0xf] }
 0x24d   : > { %1796 = vmatpush.bf16.msra.mxu0 %v2775_v18  ;;  %1809 = vmatpush.bf16.msra.mxu1 %v2839_v22 }
 0x24e   : > { %1820 = vmatpush.bf16.msrb.mxu2 %v2919_v58 }
 0x24f   : > { %1833 = vmatpush.bf16.msrb.mxu3 %v2983_v0  ;;  %v3016_v0 = vld [vmem:[#allocation6 + $0x1f8] sm:$0xf0] }
 0x251   : > { %1797 = vmatpush.bf16.msra.mxu0 %v2767_v33  ;;  %1810 = vmatpush.bf16.msra.mxu1 %v2831_v37  ;;  %v2800_v33 = vld [vmem:[#allocation6 + $0x48] sm:$0xf0] }
 0x252   : > { %1821 = vmatpush.bf16.msrb.mxu2 %v2911_v9 }
 0x255   : > { %1842 = vmatpush.bf16.msrb.mxu0 %v2827_v52  ;;  %1855 = vmatpush.bf16.msrb.mxu1 %v2891_v53  ;;  %v2959_v53 = vor.u32 %v3316_v47, %v2958_v44 }
 0x259   : > { %1843 = vmatpush.bf16.msrb.mxu0 %v2819_v1  ;;  %1856 = vmatpush.bf16.msrb.mxu1 %v2883_v4  ;;  %v2955_v1 = vor.u32 %v3313_v55, %v2952_v61  ;;  %v2784_v4 = vld [vmem:[#allocation6 + $0x28] sm:$0xf0]  ;;  %v3305_v61 = vld [vmem:[#allocation6 + $0x134] sm:$0xf] }
 0x25d   : > { %1857 = vmatpush.bf16.msrb.mxu1 %v2875_v21 }
 0x261   : > { %1858 = vmatpush.bf16.msrb.mxu1 %v2867_v41  ;;  %v2768_v41 = vld [vmem:[#allocation6 + $0x8] sm:$0xf0] }
 0x265   : > { %1859 = vmatpush.bf16.msrb.mxu1 %v2859_v60 }
 0x2b0   : > { %v1247_v13 = vpop.f32.mrf.mxu0  ;;  %v1260_v14 = vpop.f32.mrf.mxu1 }
 0x2b1   : > { %v1248_v32 = vadd.f32 %v1247_v13, %v910_v11  ;;  %v3277_v11 = vld [vmem:[#allocation6 + $0x54] sm:$0xf] }
 0x2b2   : > { %v2811_v20 = vor.u32 %v3277_v11, %v2808_v12  ;;  %v2848_v11 = vld [vmem:[#allocation6 + $0xa8] sm:$0xf0]  ;;  %v3311_v12 = vld [vmem:[#allocation6 + $0x164] sm:$0xf] }
 0x2b3   : > { %v1261_v57 = vadd.f32 %v1260_v14, %v1248_v32  ;;  %v2975_v14 = vor.u32 %v3320_v10, %v2974_v8  ;;  %v3275_v32 = vld [vmem:[#allocation6 + $0x44] sm:$0xf]  ;;  %v2787_v10 = vor.u32 %v3271_v3, %v2784_v4  ;;  %v2851_v15 = vor.u32 %v3287_v6, %v2848_v11  ;;  %v2912_v6 = vld [vmem:[#allocation6 + $0x128] sm:$0xf0] }
 0x2b4   : > { %1844 = vmatpush.bf16.msrb.mxu0 %v2811_v20  ;;  %v2803_v37 = vor.u32 %v3275_v32, %v2800_v33  ;;  %v3303_v4 = vld [vmem:[#allocation6 + $0x124] sm:$0xf] }
 0x2b5   : > { %1834 = vmatpush.bf16.msrb.mxu3 %v2975_v14  ;;  %1860 = vmatpush.bf16.msrb.mxu1 %v2851_v15  ;;  %v2915_v11 = vor.u32 %v3303_v4, %v2912_v6 }
 0x2b7   : > { %v1273_v42 = vpop.f32.mrf.mxu2  ;;  %v1286_v43 = vpop.f32.mrf.mxu3 }
 0x2b8   : > { %v1274_v48 = vadd.f32 %v1273_v42, %v911_v28  ;;  %v1249_v49 = vpop.f32.mrf.mxu0  ;;  %v1262_v50 = vpop.f32.mrf.mxu1  ;;  %v2902_v28 = vld [vmem:[#allocation6 + $0x110] sm:$0xf]  ;;  %v2894_v42 = vld [vmem:[#allocation6 + $0x100] sm:$0xf]  ;;  %1845 = vmatpush.bf16.msrb.mxu0 %v2803_v37 }
 0x2b9   : > { %v2903_v31 = vor.u32 %v3302_v29, %v2902_v28  ;;  %1835 = vmatpush.bf16.msrb.mxu3 %v2967_v36  ;;  %v2792_v49 = vld [vmem:[#allocation6 + $0x38] sm:$0xf0]  ;;  %v3309_v29 = vld [vmem:[#allocation6 + $0x154] sm:$0xf]  ;;  %v3267_v36 = vld [vmem:[#allocation6 + $0x4] sm:$0xf] }
 0x2ba   : > { %v1287_v63 = vadd.f32 %v1286_v43, %v1274_v48  ;;  %v3300_v43 = vld [vmem:[#allocation6 + $0x104] sm:$0xf0]  ;;  %v3273_v48 = vld [vmem:[#allocation6 + $0x34] sm:$0xf]  ;;  %v2939_v39 = vor.u32 %v3309_v29, %v2936_v30  ;;  %v3299_v29 = vld [vmem:[#allocation6 + $0x104] sm:$0xf] }
 0x2bb   : > { %1822 = vmatpush.bf16.msrb.mxu2 %v2903_v31  ;;  %v2895_v46 = vor.u32 %v3300_v43, %v2894_v42  ;;  %v2795_v56 = vor.u32 %v3273_v48, %v2792_v49  ;;  %v3325_v31 = vld [vmem:[#allocation6 + $0x1d4] sm:$0xf]  ;;  %v3283_v42 = vld [vmem:[#allocation6 + $0x84] sm:$0xf]  ;;  %v2832_v43 = vld [vmem:[#allocation6 + $0x88] sm:$0xf0] }
 0x2bc   : > { %v3911_v5 = vpack.c.bf16 %v1287_v63, %v1261_v57  ;;  %v3329_v63 = vld [vmem:[#allocation6 + $0x1f4] sm:$0xf]  ;;  %v3307_v48 = vld [vmem:[#allocation6 + $0x144] sm:$0xf]  ;;  %v2928_v49 = vld [vmem:[#allocation6 + $0x148] sm:$0xf0]  ;;  %v2835_v55 = vor.u32 %v3283_v42, %v2832_v43 }
 0x2bd   : > { %1836 = vmatpush.bf16.msrb.mxu3 %v2959_v53  ;;  %v3019_v2 = vor.u32 %v3329_v63, %v3016_v0  ;;  %1846 = vmatpush.bf16.msrb.mxu0 %v2795_v56  ;;  %v2992_v53 = vld [vmem:[#allocation6 + $0x1c8] sm:$0xf0]  ;;  %v2920_v63 = vld [vmem:[#allocation6 + $0x138] sm:$0xf0]  ;;  %v3321_v0 = vld [vmem:[#allocation6 + $0x1b4] sm:$0xf] }
 0x2be   : > { %v1344_v13 = vxor.u32 2147516416, %v3911_v5  ;;  %v2896_v30 = vld [vmem:[#allocation6 + $0x108] sm:$0xf0] }
 0x2bf   : > { %v1275_v17 = vpop.f32.mrf.mxu2  ;;  %v1288_v18 = vpop.f32.mrf.mxu3  ;;  %1823 = vmatpush.bf16.msrb.mxu2 %v2895_v46 }
 0x2c0   : > { %v1346_v22 = vunpack.c.l.bf16 %v1344_v13  ;;  %v1347_v25 = vunpack.c.h.bf16 %v1344_v13  ;;  %v1299_v26 = vpop.f32.mrf.mxu0  ;;  %v1312_v27 = vpop.f32.mrf.mxu1  ;;  %v2944_v13 = vld [vmem:[#allocation6 + $0x168] sm:$0xf0]  ;;  %v3327_v17 = vld [vmem:[#allocation6 + $0x1e4] sm:$0xf] }
 0x2c1   : > { %v1300_v45 = vadd.f32 %v1299_v26, %v912_v19  ;;  %1881 = vmatpush.bf16.msra.mxu3 %v3019_v2  ;;  %v2947_v16 = vor.u32 %v3311_v12, %v2944_v13  ;;  %v3008_v18 = vld [vmem:[#allocation6 + $0x1e8] sm:$0xf0]  ;;  %v3269_v19 = vld [vmem:[#allocation6 + $0x14] sm:$0xf]  ;;  %1847 = vmatpush.bf16.msrb.mxu0 %v2787_v10  ;;  %v2984_v2 = vld [vmem:[#allocation6 + $0x1b8] sm:$0xf0] }
 0x2c2   : > { %v1350_v34 = vmul.f32 1.442695, %v1346_v22  ;;  %v1352_v35 = vmul.f32 1.442695, %v1347_v25  ;;  %v3011_v22 = vor.u32 %v3327_v17, %v3008_v18  ;;  %v2776_v25 = vld [vmem:[#allocation6 + $0x18] sm:$0xf0]  ;;  %v2987_v3 = vor.u32 %v3321_v0, %v2984_v2 }
 0x2c3   : > { %v1313_v8 = vadd.f32 %v1312_v27, %v1300_v45  ;;  %1868 = vmatpush.bf16.msra.mxu2 %v2955_v1  ;;  %v3285_v26 = vld [vmem:[#allocation6 + $0x94] sm:$0xf]  ;;  %v2840_v27 = vld [vmem:[#allocation6 + $0x98] sm:$0xf0]  ;;  %v2779_v28 = vor.u32 %v3269_v19, %v2776_v25  ;;  %v2923_v1 = vor.u32 %v3305_v61, %v2920_v63 }
 0x2c4   : > { %3451 = vpow2.f32 %v1350_v34  ;;  %v2843_v34 = vor.u32 %v3285_v26, %v2840_v27  ;;  %v3301_v13 = vld [vmem:[#allocation6 + $0x114] sm:$0xf]  ;;  %v2968_v18 = vld [vmem:[#allocation6 + $0x198] sm:$0xf0] }
 0x2c5   : > { %3453 = vpow2.f32 %v1352_v35  ;;  %v3000_v35 = vld [vmem:[#allocation6 + $0x1d8] sm:$0xf0]  ;;  %1882 = vmatpush.bf16.msra.mxu3 %v3011_v22  ;;  %1848 = vmatpush.bf16.msrb.mxu0 %v2779_v28  ;;  %v3317_v17 = vld [vmem:[#allocation6 + $0x194] sm:$0xf] }
 0x2c6   : > { %1861 = vmatpush.bf16.msrb.mxu1 %v2843_v34  ;;  %v2971_v28 = vor.u32 %v3317_v17, %v2968_v18  ;;  %v2960_v34 = vld [vmem:[#allocation6 + $0x188] sm:$0xf0] }
 0x2c7   : > { %v1325_v50 = vpop.f32.mrf.mxu2  ;;  %v1338_v52 = vpop.f32.mrf.mxu3  ;;  %1869 = vmatpush.bf16.msra.mxu2 %v2947_v16  ;;  %v2904_v16 = vld [vmem:[#allocation6 + $0x118] sm:$0xf0] }
 0x2c8   : > { %v1326_v57 = vadd.f32 %v1325_v50, %v913_v40  ;;  %v1301_v58 = vpop.f32.mrf.mxu0  ;;  %v1314_v59 = vpop.f32.mrf.mxu1  ;;  %v3003_v40 = vor.u32 %v3325_v31, %v3000_v35  ;;  %v2771_v50 = vor.u32 %v3267_v36, %v2768_v41  ;;  %v2907_v27 = vor.u32 %v3301_v13, %v2904_v16 }
 0x2c9   : > { %v1384_v35 = vunpack.c.l.bf16 %v3911_v5  ;;  %v1385_v36 = vunpack.c.h.bf16 %v3911_v5 }
 0x2ca   : > { %v3452_v7 = vpop.eup %3451  ;;  %v1339_v9 = vadd.f32 %v1338_v52, %v1326_v57  ;;  %v3323_v52 = vld [vmem:[#allocation6 + $0x1c4] sm:$0xf]  ;;  %1883 = vmatpush.bf16.msra.mxu3 %v3003_v40  ;;  %v2931_v57 = vor.u32 %v3307_v48, %v2928_v49  ;;  %1849 = vmatpush.bf16.msrb.mxu0 %v2771_v50  ;;  %v2899_v40 = vor.u32 %v3299_v29, %v2896_v30 }
 0x2cb   : > { %v3454_v14 = vpop.eup %3453  ;;  %1870 = vmatpush.bf16.msra.mxu2 %v2939_v39  ;;  %v2995_v58 = vor.u32 %v3323_v52, %v2992_v53  ;;  %1862 = vmatpush.bf16.msrb.mxu1 %v2835_v55 }
 0x2cc   : > { %v1358_v20 = vpack.c.bf16 %v3454_v14, %v3452_v7  ;;  %v3916_v21 = vpack.c.bf16 %v1339_v9, %v1313_v8  ;;  %v3319_v7 = vld [vmem:[#allocation6 + $0x1a4] sm:$0xf]  ;;  %v2976_v9 = vld [vmem:[#allocation6 + $0x1a8] sm:$0xf0] }
 0x2cd   : > { %v2979_v12 = vor.u32 %v3319_v7, %v2976_v9  ;;  %v1464_v7 = vld [vmem:[%s4101_s10] sm:$0x3] }
 0x2ce   : > { %v1360_v51 = vunpack.c.l.bf16 %v1358_v20  ;;  %v1361_v32 = vunpack.c.h.bf16 %v1358_v20  ;;  %v1345_v33 = vxor.u32 2147516416, %v3916_v21  ;;  %1884 = vmatpush.bf16.msra.mxu3 %v2995_v58  ;;  %v1386_v53 = vunpack.c.l.bf16 %v3916_v21 }
 0x2cf   : > { %v1327_v37 = vpop.f32.mrf.mxu2  ;;  %v1340_v38 = vpop.f32.mrf.mxu3  ;;  %1871 = vmatpush.bf16.msra.mxu2 %v2931_v57  ;;  %v1467_v13 = vperm.slane %v1464_v7, 1 }
 0x2d0   : > { %v1364_v44 = vadd.f32 1.0, %v1360_v51  ;;  %v1365_v45 = vadd.f32 1.0, %v1361_v32  ;;  %v1348_v46 = vunpack.c.l.bf16 %v1345_v33  ;;  %v1349_v47 = vunpack.c.h.bf16 %v1345_v33  ;;  %v3315_v33 = vld [vmem:[#allocation6 + $0x184] sm:$0xf] }
 0x2d1   : > { %v2963_v41 = vor.u32 %v3315_v33, %v2960_v34  ;;  %v3341_v33 = vld [vmem:[#allocation7 + $0x50] sm:$0xff] }
 0x2d2   : > { %v1368_v56 = vpack.c.bf16 %v1365_v45, %v1364_v44  ;;  %v1354_v54 = vmul.f32 1.442695, %v1348_v46  ;;  %v1356_v62 = vmul.f32 1.442695, %v1349_v47  ;;  %1885 = vmatpush.bf16.msra.mxu3 %v2987_v3  ;;  %v3338_v3 = vld [vmem:[#allocation7 + $0x38] sm:$0xff] }
 0x2d3   : > { %1872 = vmatpush.bf16.msra.mxu2 %v2923_v1 }
 0x2d4   : > { %3455 = vpow2.f32 %v1354_v54  ;;  %v1370_v59 = vunpack.c.h.bf16 %v1368_v56  ;;  %v1371_v60 = vunpack.c.l.bf16 %v1368_v56  ;;  %v1387_v56 = vunpack.c.h.bf16 %v3916_v21  ;;  %v3346_v21 = vld [vmem:[#allocation7 + $0x78] sm:$0xff] }
 0x2d5   : > { %3457 = vpow2.f32 %v1356_v62 }
 0x2d6   : > { %3459 = vrcp.f32 %v1370_v59  ;;  %1886 = vmatpush.bf16.msra.mxu3 %v2979_v12  ;;  %v1466_v12 = vperm.slane %v1464_v7, 0  ;;  %v3170_v7 = vld [vmem:[%s4104_s13 + $0xa8] sm:$0xf] }
 0x2d7   : > { %3461 = vrcp.f32 %v1371_v60  ;;  %1873 = vmatpush.bf16.msra.mxu2 %v2915_v11  ;;  %v3345_v11 = vld [vmem:[#allocation7 + $0x70] sm:$0xff] }
 0x2da   : > { %v3456_v8 = vpop.eup %3455  ;;  %1887 = vmatpush.bf16.msra.mxu3 %v2971_v28 }
 0x2db   : > { %v3458_v10 = vpop.eup %3457  ;;  %1874 = vmatpush.bf16.msra.mxu2 %v2907_v27  ;;  %v3342_v27 = vld [vmem:[#allocation7 + $0x58] sm:$0xff] }
 0x2dc   : > { %v3460_v14 = vpop.eup %3459  ;;  %v1359_v15 = vpack.c.bf16 %v3458_v10, %v3456_v8  ;;  %v3337_v10 = vld [vmem:[#allocation7 + $0x30] sm:$0xff] }
 0x2dd   : > { %v3462_v19 = vpop.eup %3461  ;;  %v1373_v20 = vmul.f32 %v3460_v14, %v3783_v23  ;;  %v3336_v14 = vld [vmem:[#allocation7 + $0x28] sm:$0xff] }
 0x2de   : > { %v1362_v22 = vunpack.c.l.bf16 %v1359_v15  ;;  %v1363_v25 = vunpack.c.h.bf16 %v1359_v15  ;;  %v1375_v26 = vmul.f32 %v3462_v19, %v3785_v24  ;;  %1888 = vmatpush.bf16.msra.mxu3 %v2963_v41  ;;  %v3344_v15 = vld [vmem:[#allocation7 + $0x68] sm:$0xff] }
 0x2df   : > { %1875 = vmatpush.bf16.msra.mxu2 %v2899_v40 }
 0x2e0   : > { %v1366_v31 = vadd.f32 1.0, %v1362_v22  ;;  %v1367_v51 = vadd.f32 1.0, %v1363_v25  ;;  %v1376_v32 = vpack.c.bf16 %v1373_v20, %v1375_v26  ;;  %v3335_v20 = vld [vmem:[#allocation7 + $0x20] sm:$0xff]  ;;  %v3334_v26 = vld [vmem:[#allocation7 + $0x18] sm:$0xff] }
 0x2e1   : > { %v3343_v22 = vld [vmem:[#allocation7 + $0x60] sm:$0xff] }
 0x2e2   : > { %v1369_v37 = vpack.c.bf16 %v1367_v51, %v1366_v31  ;;  %v1388_v38 = vunpack.c.l.bf16 %v1376_v32  ;;  %v1389_v39 = vunpack.c.h.bf16 %v1376_v32  ;;  %v3333_v32 = vld [vmem:[#allocation7 + $0x10] sm:$0xff] }
 0x2e4   : > { %v1392_v42 = vmul.f32 %v1388_v38, %v1384_v35  ;;  %v1393_v43 = vmul.f32 %v1389_v39, %v1385_v36  ;;  %v1377_v44 = vunpack.c.h.bf16 %v1369_v37  ;;  %v1378_v45 = vunpack.c.l.bf16 %v1369_v37  ;;  %v3332_v37 = vld [vmem:[#allocation7 + $0x8] sm:$0xff] }
 0x2e5   : > { %v3340_v38 = vld [vmem:[#allocation7 + $0x48] sm:$0xff] }
 0x2e6   : > { %v1396_v46 = vpack.c.bf16 %v1392_v42, %v1392_v42  ;;  %v1397_v47 = vpack.c.bf16 %v1393_v43, %v1393_v43  ;;  %3463 = vrcp.f32 %v1377_v44  ;;  %v3331_v44 = vld [vmem:[#allocation7] sm:$0xff] }
 0x2e7   : > { %3465 = vrcp.f32 %v1378_v45  ;;  %v3339_v45 = vld [vmem:[#allocation7 + $0x40] sm:$0xff] }
 0x2e8   : > { %1798 = vmatmul.bf16.vlgmr.msra.gmra.mxu0 %v1396_v46  ;;  %1811 = vmatmul.bf16.vlgmr.msra.gmra.mxu1 %v1397_v47 }
 0x2e9   : > { %2055 = vmatpush.bf16.msra.mxu0 %v3338_v3  ;;  %2068 = vmatpush.bf16.msra.mxu1 %v3346_v21 }
 0x2ec   : > { %v3464_v5 = vpop.eup %3463 }
 0x2ed   : > { %v3466_v48 = vpop.eup %3465  ;;  %v1380_v49 = vmul.f32 %v3464_v5, %v3783_v23  ;;  %2056 = vmatpush.bf16.msra.mxu0 %v3337_v10  ;;  %2069 = vmatpush.bf16.msra.mxu1 %v3345_v11  ;;  %v3172_v11 = vld [vmem:[%s4104_s13 + $0xb4] sm:$0xf0] }
 0x2ee   : > { %v1382_v50 = vmul.f32 %v3466_v48, %v3785_v24 }
 0x2f0   : > { %v1383_v52 = vpack.c.bf16 %v1380_v49, %v1382_v50 }
 0x2f1   : > { %2057 = vmatpush.bf16.msra.mxu0 %v3336_v14  ;;  %2070 = vmatpush.bf16.msra.mxu1 %v3344_v15 }
 0x2f2   : > { %v1390_v54 = vunpack.c.l.bf16 %v1383_v52  ;;  %v1391_v62 = vunpack.c.h.bf16 %v1383_v52 }
 0x2f4   : > { %v1394_v55 = vmul.f32 %v1390_v54, %v1386_v53  ;;  %v1395_v57 = vmul.f32 %v1391_v62, %v1387_v56 }
 0x2f5   : > { %2058 = vmatpush.bf16.msra.mxu0 %v3335_v20  ;;  %2071 = vmatpush.bf16.msra.mxu1 %v3343_v22  ;;  %v3160_v20 = vld [vmem:[%s4104_s13 + $0x9c] sm:$0xf0]  ;;  %v3166_v22 = vld [vmem:[%s4104_s13 + $0x98] sm:$0xf] }
 0x2f6   : > { %v1398_v58 = vpack.c.bf16 %v1394_v55, %v1394_v55  ;;  %v1399_v59 = vpack.c.bf16 %v1395_v57, %v1395_v57 }
 0x2f8   : > { %1824 = vmatmul.bf16.vlgmr.msrb.gmra.mxu2 %v1398_v58  ;;  %1837 = vmatmul.bf16.vlgmr.msrb.gmra.mxu3 %v1399_v59 }
 0x2f9   : > { %1850 = vmatmul.bf16.vlgmr.msrb.gmra.mxu0 %v1396_v46  ;;  %1863 = vmatmul.bf16.vlgmr.msrb.gmra.mxu1 %v1397_v47 }
 0x2fa   : > { %2059 = vmatpush.bf16.msra.mxu0 %v3334_v26  ;;  %2072 = vmatpush.bf16.msra.mxu1 %v3342_v27 }
 0x2fe   : > { %2060 = vmatpush.bf16.msra.mxu0 %v3333_v32  ;;  %2073 = vmatpush.bf16.msra.mxu1 %v3341_v33  ;;  %v3154_v32 = vld [vmem:[%s4104_s13 + $0x80] sm:$0xf]  ;;  %v3364_v33 = vld [vmem:[%s4104_s13 + $0x88] sm:$0xf0] }
 0x302   : > { %2061 = vmatpush.bf16.msra.mxu0 %v3332_v37  ;;  %2074 = vmatpush.bf16.msra.mxu1 %v3340_v38  ;;  %v3360_v37 = vld [vmem:[%s4104_s13 + $0x68] sm:$0xf0]  ;;  %v3359_v38 = vld [vmem:[%s4104_s13 + $0x64] sm:$0xf] }
 0x306   : > { %2062 = vmatpush.bf16.msra.mxu0 %v3331_v44  ;;  %2075 = vmatpush.bf16.msra.mxu1 %v3339_v45  ;;  %v3430_v45 = vld [vmem:[%s4118_s21] ss:$0 sm:$0xff] }
 0x308   : > { %1876 = vmatmul.bf16.vlgmr.msra.gmra.mxu2 %v1398_v58  ;;  %1889 = vmatmul.bf16.vlgmr.msra.gmra.mxu3 %v1399_v59 }
 0x365   : > { %v1799_v60 = vpop.f32.mrf.mxu0  ;;  %v1812_v61 = vpop.f32.mrf.mxu1 }
 0x366   : > { %v1800_v18 = vadd.f32 %v1799_v60, %v1466_v12  ;;  %v3178_v12 = vld [vmem:[%s4104_s13 + $0xb0] sm:$0xf] }
 0x368   : > { %v1813_v25 = vadd.f32 %v1812_v61, %v1800_v18  ;;  %v3365_v18 = vld [vmem:[%s4104_s13 + $0x94] sm:$0xf] }
 0x369   : > { %v3163_v26 = vor.u32 %v3365_v18, %v3160_v20  ;;  %v3086_v18 = vld [vmem:[%s4104_s13] sm:$0xf]  ;;  %v3347_v20 = vld [vmem:[%s4104_s13 + $0x4] sm:$0xf] }
 0x36d   : > { %v1801_v63 = vpop.f32.mrf.mxu0  ;;  %v1814_v0 = vpop.f32.mrf.mxu1 }
 0x376   : > { %v1851_v1 = vpop.f32.mrf.mxu0  ;;  %v1864_v2 = vpop.f32.mrf.mxu1 }
 0x377   : > { %v1852_v19 = vadd.f32 %v1851_v1, %v1467_v13  ;;  %v3370_v13 = vld [vmem:[%s4104_s13 + $0xb8] sm:$0xf0] }
 0x378   : > { %v3179_v15 = vor.u32 %v3370_v13, %v3178_v12 }
 0x379   : > { %v1865_v28 = vadd.f32 %v1864_v2, %v1852_v19 }
 0x37a   : > { %2295 = vmatpush.bf16.msrb.mxu0 %v3179_v15  ;;  %v3352_v15 = vld [vmem:[%s4104_s13 + $0x28] sm:$0xf0] }
 0x37b   : > { %v1825_v4 = vpop.f32.mrf.mxu2  ;;  %v1838_v6 = vpop.f32.mrf.mxu3 }
 0x37c   : > { %v1826_v29 = vadd.f32 %v1825_v4, %v1813_v25  ;;  %v3367_v25 = vld [vmem:[%s4104_s13 + $0xa0] sm:$0xf0] }
 0x37d   : > { %v3167_v27 = vor.u32 %v3367_v25, %v3166_v22 }
 0x37e   : > { %v1853_v8 = vpop.f32.mrf.mxu0  ;;  %v1866_v9 = vpop.f32.mrf.mxu1  ;;  %v1839_v34 = vadd.f32 %v1838_v6, %v1826_v29  ;;  %v3363_v29 = vld [vmem:[%s4104_s13 + $0x80] sm:$0xf0] }
 0x37f   : > { %v3369_v8 = vld [vmem:[%s4104_s13 + $0xb0] sm:$0xf0]  ;;  %v3368_v9 = vld [vmem:[%s4104_s13 + $0xac] sm:$0xf]  ;;  %2296 = vmatpush.bf16.msrb.mxu0 %v3167_v27  ;;  %v3094_v27 = vld [vmem:[%s4104_s13 + $0x8] sm:$0xf] }
 0x380   : > { %v3171_v10 = vor.u32 %v3369_v8, %v3170_v7  ;;  %v3175_v14 = vor.u32 %v3368_v9, %v3172_v11  ;;  %v3350_v7 = vld [vmem:[%s4104_s13 + $0x1c] sm:$0xf]  ;;  %v3106_v11 = vld [vmem:[%s4104_s13 + $0x20] sm:$0xf] }
 0x382   : > { %2269 = vmatpush.bf16.msrb.mxu2 %v3171_v10  ;;  %2282 = vmatpush.bf16.msrb.mxu3 %v3175_v14  ;;  %v3100_v10 = vld [vmem:[%s4104_s13 + $0x24] sm:$0xf0] }
 0x383   : > { %v1827_v16 = vpop.f32.mrf.mxu2  ;;  %v1840_v17 = vpop.f32.mrf.mxu3  ;;  %v3103_v14 = vor.u32 %v3350_v7, %v3100_v10 }
 0x384   : > { %v3158_v16 = vld [vmem:[%s4104_s13 + $0x90] sm:$0xf]  ;;  %v3366_v17 = vld [vmem:[%s4104_s13 + $0x98] sm:$0xf0] }
 0x385   : > { %v3159_v19 = vor.u32 %v3366_v17, %v3158_v16  ;;  %v3107_v17 = vor.u32 %v3352_v15, %v3106_v11 }
 0x386   : > { %2283 = vmatpush.bf16.msrb.mxu3 %v3163_v26  ;;  %v3088_v26 = vld [vmem:[%s4104_s13 + $0xc] sm:$0xf0] }
 0x387   : > { %2270 = vmatpush.bf16.msrb.mxu2 %v3159_v19  ;;  %v3348_v19 = vld [vmem:[%s4104_s13 + $0x8] sm:$0xf0] }
 0x388   : > { %v3087_v25 = vor.u32 %v3348_v19, %v3086_v18 }
 0x38b   : > { %v1877_v30 = vpop.f32.mrf.mxu2  ;;  %v1890_v31 = vpop.f32.mrf.mxu3 }
 0x38c   : > { %v1878_v51 = vadd.f32 %v1877_v30, %v1865_v28  ;;  %v3146_v28 = vld [vmem:[%s4104_s13 + $0x78] sm:$0xf]  ;;  %v3362_v30 = vld [vmem:[%s4104_s13 + $0x7c] sm:$0xf] }
 0x38e   : > { %v1891_v35 = vadd.f32 %v1890_v31, %v1878_v51  ;;  %v3147_v31 = vor.u32 %v3363_v29, %v3146_v28  ;;  %v3148_v51 = vld [vmem:[%s4104_s13 + $0x84] sm:$0xf0]  ;;  %v3091_v28 = vor.u32 %v3347_v20, %v3088_v26  ;;  %v3349_v29 = vld [vmem:[%s4104_s13 + $0x10] sm:$0xf0] }
 0x390   : > { %v1894_v36 = vpack.c.bf16 %v1891_v35, %v1839_v34  ;;  %v3151_v34 = vor.u32 %v3362_v30, %v3148_v51  ;;  %v3155_v35 = vor.u32 %v3364_v33, %v3154_v32  ;;  %2271 = vmatpush.bf16.msrb.mxu2 %v3147_v31  ;;  %v3095_v30 = vor.u32 %v3349_v29, %v3094_v27 }
 0x392   : > { %v1895_v39 = vxor.u32 2147516416, %v1894_v36  ;;  %v1915_v63 = vunpack.c.l.bf16 %v1894_v36  ;;  %v1916_v0 = vunpack.c.h.bf16 %v1894_v36  ;;  %2284 = vmatpush.bf16.msrb.mxu3 %v3151_v34  ;;  %2297 = vmatpush.bf16.msrb.mxu0 %v3155_v35  ;;  %v3134_v36 = vld [vmem:[%s4104_s13 + $0x60] sm:$0xf] }
 0x393   : > { %v1879_v40 = vpop.f32.mrf.mxu2  ;;  %v1892_v41 = vpop.f32.mrf.mxu3 }
 0x394   : > { %v1896_v42 = vunpack.c.l.bf16 %v1895_v39  ;;  %v1897_v43 = vunpack.c.h.bf16 %v1895_v39  ;;  %v3135_v39 = vor.u32 %v3360_v37, %v3134_v36  ;;  %v3136_v40 = vld [vmem:[%s4104_s13 + $0x6c] sm:$0xf0]  ;;  %v3142_v41 = vld [vmem:[%s4104_s13 + $0x68] sm:$0xf] }
 0x396   : > { %v1898_v46 = vmul.f32 1.442695, %v1896_v42  ;;  %v1900_v47 = vmul.f32 1.442695, %v1897_v43  ;;  %v3361_v42 = vld [vmem:[%s4104_s13 + $0x70] sm:$0xf0]  ;;  %v3139_v43 = vor.u32 %v3359_v38, %v3136_v40  ;;  %2272 = vmatpush.bf16.msrb.mxu2 %v3135_v39 }
 0x397   : > { %v3143_v44 = vor.u32 %v3361_v42, %v3142_v41 }
 0x398   : > { %3467 = vpow2.f32 %v1898_v46  ;;  %2285 = vmatpush.bf16.msrb.mxu3 %v3139_v43  ;;  %v3122_v46 = vld [vmem:[%s4104_s13 + $0x48] sm:$0xf] }
 0x399   : > { %3469 = vpow2.f32 %v1900_v47  ;;  %2298 = vmatpush.bf16.msrb.mxu0 %v3143_v44  ;;  %v3357_v47 = vld [vmem:[%s4104_s13 + $0x50] sm:$0xf0] }
 0x39e   : > { %v3468_v5 = vpop.eup %3467 }
 0x39f   : > { %v3470_v48 = vpop.eup %3469 }
 0x3a0   : > { %v1902_v49 = vpack.c.bf16 %v3470_v48, %v3468_v5  ;;  %v3356_v5 = vld [vmem:[%s4104_s13 + $0x4c] sm:$0xf]  ;;  %v3123_v48 = vor.u32 %v3357_v47, %v3122_v46  ;;  %v2133_v46 = vld [vmem:[%s4119_s19] sm:$0x7] }
 0x3a1   : > { %v2137_v47 = vperm.slane %v2133_v46, 2 }
 0x3a2   : > { %v1903_v50 = vunpack.c.l.bf16 %v1902_v49  ;;  %v1904_v52 = vunpack.c.h.bf16 %v1902_v49  ;;  %v3124_v49 = vld [vmem:[%s4104_s13 + $0x54] sm:$0xf0]  ;;  %2273 = vmatpush.bf16.msrb.mxu2 %v3123_v48  ;;  %v2136_v48 = vperm.slane %v2133_v46, 1 }
 0x3a4   : > { %v1905_v53 = vadd.f32 1.0, %v1903_v50  ;;  %v1906_v56 = vadd.f32 1.0, %v1904_v52  ;;  %v3130_v50 = vld [vmem:[%s4104_s13 + $0x50] sm:$0xf]  ;;  %v3358_v52 = vld [vmem:[%s4104_s13 + $0x58] sm:$0xf0] }
 0x3a6   : > { %v1907_v54 = vpack.c.bf16 %v1906_v56, %v1905_v53 }
 0x3a8   : > { %v1908_v62 = vunpack.c.h.bf16 %v1907_v54  ;;  %v1909_v55 = vunpack.c.l.bf16 %v1907_v54  ;;  %v3127_v54 = vor.u32 %v3356_v5, %v3124_v49  ;;  %v2135_v5 = vperm.slane %v2133_v46, 0 }
 0x3aa   : > { %3471 = vrcp.f32 %v1908_v62  ;;  %v3131_v62 = vor.u32 %v3358_v52, %v3130_v50  ;;  %2286 = vmatpush.bf16.msrb.mxu3 %v3127_v54 }
 0x3ab   : > { %3473 = vrcp.f32 %v1909_v55 }
 0x3ac   : > { %2299 = vmatpush.bf16.msrb.mxu0 %v3131_v62 }
 0x3b0   : > { %v3472_v57 = vpop.eup %3471 }
 0x3b1   : > { %v3474_v58 = vpop.eup %3473  ;;  %v1911_v59 = vmul.f32 %v3472_v57, %v3783_v23  ;;  %v3110_v57 = vld [vmem:[%s4104_s13 + $0x30] sm:$0xf] }
 0x3b2   : > { %v1913_v60 = vmul.f32 %v3474_v58, %v3785_v24  ;;  %v3354_v58 = vld [vmem:[%s4104_s13 + $0x38] sm:$0xf0] }
 0x3b4   : > { %v1914_v61 = vpack.c.bf16 %v1911_v59, %v1913_v60  ;;  %v3353_v59 = vld [vmem:[%s4104_s13 + $0x34] sm:$0xf] }
 0x3b6   : > { %v1917_v1 = vunpack.c.l.bf16 %v1914_v61  ;;  %v1918_v2 = vunpack.c.h.bf16 %v1914_v61  ;;  %v3111_v61 = vor.u32 %v3354_v58, %v3110_v57 }
 0x3b8   : > { %v1919_v3 = vmul.f32 %v1917_v1, %v1915_v63  ;;  %v1920_v21 = vmul.f32 %v1918_v2, %v1916_v0  ;;  %v3112_v63 = vld [vmem:[%s4104_s13 + $0x3c] sm:$0xf0]  ;;  %v3118_v0 = vld [vmem:[%s4104_s13 + $0x38] sm:$0xf]  ;;  %v3355_v1 = vld [vmem:[%s4104_s13 + $0x40] sm:$0xf0]  ;;  %2274 = vmatpush.bf16.msrb.mxu2 %v3111_v61 }
 0x3b9   : > { %v3115_v2 = vor.u32 %v3353_v59, %v3112_v63 }
 0x3ba   : > { %v1921_v4 = vpack.c.bf16 %v1919_v3, %v1919_v3  ;;  %v1922_v6 = vpack.c.bf16 %v1920_v21, %v1920_v21  ;;  %v3119_v3 = vor.u32 %v3355_v1, %v3118_v0 }
 0x3bb   : > { %2287 = vmatpush.bf16.msrb.mxu3 %v3115_v2 }
 0x3bc   : > { %2063 = vmatmul.bf16.vlgmr.msra.gmra.mxu0 %v1921_v4  ;;  %2076 = vmatmul.bf16.vlgmr.msra.gmra.mxu1 %v1922_v6  ;;  %v3098_v4 = vld [vmem:[%s4104_s13 + $0x18] sm:$0xf]  ;;  %v3351_v6 = vld [vmem:[%s4104_s13 + $0x20] sm:$0xf0] }
 0x3bd   : > { %2300 = vmatpush.bf16.msrb.mxu0 %v3119_v3  ;;  %v3099_v9 = vor.u32 %v3351_v6, %v3098_v4 }
 0x3bf   : > { %2275 = vmatpush.bf16.msrb.mxu2 %v3099_v9  ;;  %2288 = vmatpush.bf16.msrb.mxu3 %v3103_v14 }
 0x3c1   : > { %2301 = vmatpush.bf16.msrb.mxu0 %v3107_v17 }
 0x3c3   : > { %2276 = vmatpush.bf16.msrb.mxu2 %v3087_v25  ;;  %2289 = vmatpush.bf16.msrb.mxu3 %v3091_v28 }
 0x3c5   : > { %2302 = vmatpush.bf16.msrb.mxu0 %v3095_v30 }
 0x439   : > { %v2064_v53 = vpop.f32.mrf.mxu0  ;;  %v2077_v56 = vpop.f32.mrf.mxu1 }
 0x43a   : > { %v2065_v55 = vadd.f32 %v3430_v45, %v2064_v53 }
 0x43c   : > { %v2078_v60 = vadd.f32 %v2077_v56, %v2065_v55 }
 0x43e   : > { %v2081_v21 = vpack.c.bf16 %v2078_v60, %v2078_v60 }
 0x440   : > { %v2082_v8 = vxor.u32 2147516416, %v2081_v21  ;;  %v2097_v42 = vunpack.c.l.bf16 %v2081_v21 }
 0x441   : > { %v2066_v12 = vpop.f32.mrf.mxu0  ;;  %v2079_v13 = vpop.f32.mrf.mxu1 }
 0x442   : > { %v2083_v16 = vunpack.c.l.bf16 %v2082_v8 }
 0x444   : > { %v2084_v22 = vmul.f32 1.442695, %v2083_v16 }
 0x446   : > { %3475 = vpow2.f32 %v2084_v22 }
 0x44c   : > { %v3476_v31 = vpop.eup %3475 }
 0x44d   : > { %v2086_v51 = vpack.c.bf16 %v3476_v31, %v3476_v31 }
 0x44f   : > { %v2087_v32 = vunpack.c.l.bf16 %v2086_v51 }
 0x451   : > { %v2088_v33 = vadd.f32 1.0, %v2087_v32 }
 0x453   : > { %v2089_v34 = vpack.c.bf16 %v2088_v33, %v2088_v33 }
 0x455   : > { %v2090_v35 = vunpack.c.h.bf16 %v2089_v34  ;;  %v2091_v36 = vunpack.c.l.bf16 %v2089_v34 }
 0x457   : > { %3477 = vrcp.f32 %v2090_v35 }
 0x458   : > { %3479 = vrcp.f32 %v2091_v36 }
 0x45d   : > { %v3478_v37 = vpop.eup %3477 }
 0x45e   : > { %v3480_v38 = vpop.eup %3479  ;;  %v2093_v39 = vmul.f32 %v3478_v37, %v3783_v23 }
 0x45f   : > { %v2095_v40 = vmul.f32 %v3480_v38, %v3785_v24 }
 0x461   : > { %v2096_v41 = vpack.c.bf16 %v2093_v39, %v2095_v40 }
 0x463   : > { %v2098_v43 = vunpack.c.l.bf16 %v2096_v41 }
 0x465   : > { %v2099_v44 = vmul.f32 %v2098_v43, %v2097_v42 }
 0x467   : > { %v2100_v45 = vpack.c.bf16 %v2099_v44, %v2099_v44 }
 0x469   : > { %2277 = vmatmul.bf16.vlgmr.msrb.gmra.mxu2 %v2100_v45  ;;  %2290 = vmatmul.bf16.vlgmr.msrb.gmra.mxu3 %v2100_v45 }
 0x46a   : > { %2303 = vmatmul.bf16.vlgmr.msrb.gmra.mxu0 %v2100_v45 }
 0x4e7   : > { %v2304_v23 = vpop.f32.mrf.mxu0 }
 0x4e8   : > { %v2305_v24 = vadd.f32 %v2304_v23, %v2137_v47 }
 0x4ea   : > { %2310 = vst [vmem:[%s558_s30 + $0x10] sm:$0xff] %v2305_v24 }
 0x4ec   : > { %v2278_v49 = vpop.f32.mrf.mxu2  ;;  %v2291_v50 = vpop.f32.mrf.mxu3 }
 0x4ed   : > { %v2279_v52 = vadd.f32 %v2278_v49, %v2135_v5  ;;  %v2292_v53 = vadd.f32 %v2291_v50, %v2136_v48 }
 0x4ef   : > { %2308 = vst [vmem:[%s558_s30] sm:$0xff] %v2279_v52  ;;  %v2306_v56 = vpop.f32.mrf.mxu0 }
 0x4f0   : > { %2309 = vst [vmem:[%s558_s30 + $0x8] sm:$0xff] %v2292_v53 }
 0x4f4   : > { %v2280_v54 = vpop.f32.mrf.mxu2  ;;  %v2293_v62 = vpop.f32.mrf.mxu3 }
 0x4f5 PF: > { %s4121_s22 = sld [smem:[#allocation12_spill]] }
 0x4fb   : > { %s28_s18 = sadd.s32 1, %s4121_s22  }
 0x4fc   : > { %p25_p7 = scmp.ge.s32.totalorder %s28_s18, 4  }
 0x4fe   :  { %27 = sbr.rel (!%p25_p7) target bundleno = 9 (0x9), region = 127 }
 0x503   :  { %2332 = vsyncpa [#allocation3], 1 }
 0x504   :  { %2334 = vsyncpa [#allocation3 + $0x1], 1 }
 0x505   :  { %2335 = vsyncpa [#allocation5], 1 }
 0x506   :  { %2336 = vsyncpa [#allocation8], 1 }

</bundles_post_ra>
